<compile_context>
chip_gen: v5e
topology: v5e:2x2
jax: 0.10.0
libtpu: 0.0.40
codegen_flags: <defaults>
</compile_context>

<pallas_src>
import functools

import jax
import jax.numpy as jnp
from jax.experimental import pallas as pl
from jax.experimental.pallas import tpu as pltpu

_VMEM_BUDGET = 24 * 1024 * 1024        # sizing budget for the batch tile
_VMEM_LIMIT_BYTES = 48 * 1024 * 1024   # < v7x 64 MiB physical; plenty of headroom


def _round_up(x, m):
    return (x + m - 1) // m * m


def network_kernel(x_ref, wconv_ref, bconv_ref, wcls_ref, bcls_ref, out_ref,
                   *, L, Lm, use_roll):
    """Fused Conv1d(k=3, p=1) -> global max-pool -> bias/ReLU -> Linear head.

    x_ref    : (TB, Lp, Cin)  bf16; per-row layout [pad, tok_0..tok_{L-1}, zero pads]
    wconv_ref: (3, Cin, Cout) bf16 conv weight, tap-major
    bconv_ref: (1, Cout)      f32
    wcls_ref : (Cout, NC_P)   bf16 (classifier weight, N padded to 128 lanes)
    bcls_ref : (1, NC_P)      f32
    out_ref  : (TB, 1, NC_P)  f32
    """
    TB, Lp, Cin = x_ref.shape
    Cout = wconv_ref.shape[2]
    x = x_ref[...]                                   # bf16, fed straight to the MXU

    if use_roll:
        # Conv as 3 full-length matmuls over the padded sequence, combined with XLU
        # sublane rolls (no sublane-offset slices -> no relayout copies):
        #   y[l] = sum_t z_t[l + t],  z_t = x_pad @ W[t]
        xf = x.reshape(TB * Lp, Cin)                 # contiguous (Lp % 8 == 0)
        n = TB * Lp
        acc = jnp.dot(xf, wconv_ref[0], preferred_element_type=jnp.float32)
        for t in (1, 2):
            z = jnp.dot(xf, wconv_ref[t], preferred_element_type=jnp.float32)
            # pltpu.roll matches jnp.roll; shift n - t puts z[l + t] at row l.
            # Wrapped / cross-batch rows land only at l >= Lp - 2 > L and are masked.
            acc = acc + pltpu.roll(z, n - t, 0)
        y = acc.reshape(TB, Lp, Cout)
        Lc = Lp
    else:
        # Short-sequence fallback: 3 shifted-tap matmuls at exactly Lm output rows
        # (no extra MXU rows; preferred on MXU-bound v5e with small L).
        def tap(t):
            xt = x[:, t:t + Lm, :].reshape(TB * Lm, Cin)
            return jnp.dot(xt, wconv_ref[t], preferred_element_type=jnp.float32)

        y = (tap(0) + tap(1) + tap(2)).reshape(TB, Lm, Cout)
        Lc = Lm

    if Lc > L:  # static: mask alignment-padding / wrapped rows out of the max
        l_idx = jax.lax.broadcasted_iota(jnp.int32, (1, Lc, Cout), 1)
        y = jnp.where(l_idx < L, y, -jnp.inf)

    # AdaptiveMaxPool1d(1) over the sequence; conv bias + ReLU after the pool
    # (exactly equivalent: ReLU is monotone and the bias is per-channel).
    pooled = jnp.max(y, axis=1)                          # (TB, Cout) f32
    act = jnp.maximum(pooled + bconv_ref[...], 0.0)

    # ClassificationHead: Dropout == identity at inference, then Linear.
    logits = jnp.dot(act.astype(jnp.bfloat16), wcls_ref[...],
                     preferred_element_type=jnp.float32)
    out_ref[...] = (logits + bcls_ref[...])[:, None, :]


def prepare_params(params):
    """One-time layout prep — hoisted out of the per-call path.

    For a real navec vocab (~500K x 300) this avoids a full-table HBM copy on every
    forward call; storing the table in bf16 also halves the gather's HBM reads.
    """
    emb = params["emb"]                                  # (V, Cin) f32
    V, Cin = emb.shape
    # Zero "pad token" row implements Conv1d(padding=1) directly in the token gather.
    emb_p = jnp.concatenate(
        [emb, jnp.zeros((1, Cin), emb.dtype)], axis=0).astype(jnp.bfloat16)
    num_classes = params["w_cls"].shape[1]
    nc_p = _round_up(num_classes, 128)                   # lane-dense output block
    w_cls = jnp.pad(params["w_cls"], ((0, 0), (0, nc_p - num_classes)))
    b_cls = jnp.pad(params["b_cls"], ((0, 0), (0, nc_p - num_classes)))
    return {
        "emb": emb_p,                                    # (V+1, Cin) bf16
        "pad_id": V,
        "w_conv": params["w_conv"].astype(jnp.bfloat16),  # (3, Cin, Cout)
        "b_conv": params["b_conv"].astype(jnp.float32),   # (1, Cout)
        "w_cls": w_cls.astype(jnp.bfloat16),              # (Cout, nc_p)
        "b_cls": b_cls.astype(jnp.float32),               # (1, nc_p)
        "num_classes": num_classes,
    }


def network_forward(tokens, prep):
    emb = prep["emb"]
    B, L = tokens.shape
    _, Cin = emb.shape
    K, _, Cout = prep["w_conv"].shape
    nc_p = prep["w_cls"].shape[1]
    num_classes = prep["num_classes"]

    # Conv padding=1 + sublane alignment folded into the gather layout:
    # per row [pad, tok_0 .. tok_{L-1}, zero pads], length Lp (multiple of 8).
    Lm = _round_up(L, 8)          # conv-output rows per batch element
    Lp = Lm + 8                   # padded input rows (>= L + 2)
    use_roll = Lm >= 64           # roll-combine once the Lp/Lm MXU overhead <= ~12%
    # TODO(synk): chip-gate the roll/tap choice via pltpu.get_tpu_info — on the
    #             MXU-bound v5e the sliced-tap form stays preferable for longer L.

    # ---- batch tile: fill the MXU M dimension, bounded by an explicit VMEM budget ----
    tb_target = max(1, 2048 // Lm)
    per_tb = (2 * Lp * Cin * 2            # double-buffered bf16 input tile
              + 3 * Lp * Cout * 4         # f32 conv temporaries (z / acc / rolled)
              + Lp * Cin * 2)             # slack for relayout copies
    fixed = 2 * (K * Cin * Cout * 2 + Cout * 4 + Cout * nc_p * 2 + nc_p * 4) + (2 << 20)
    tb_vmem = max(1, int((_VMEM_BUDGET - fixed) // per_tb))
    tb = max(1, min(tb_target, tb_vmem))
    if B >= 16:                   # keep >= 2 grid steps so v7x megacore can split B
        tb = min(tb, (B + 1) // 2)
    if tb >= B:
        TB, Bp = B, B
    else:
        TB = tb
        Bp = _round_up(B, TB)

    pad_id = prep["pad_id"]
    tokens_p = jnp.full((Bp, Lp), pad_id, dtype=tokens.dtype)
    tokens_p = tokens_p.at[:B, 1:1 + L].set(tokens)

    # Embedding lookup kept as plain-JAX glue (pure gather) straight into the
    # conv-padded bf16 layout; Cin stays 300 (no lane pad of the dominant tensor).
    # TODO(synk): fuse the gather into the kernel (scalar-prefetch token ids + manual
    #             DMA from the HBM table) to remove the HBM round trip of x.
    # TODO(synk): the real NavecEmbedding dequantizes a quantized table; we model it
    #             as a dense (vocab, 300) float table of the same logical shape.
    x = emb[tokens_p]                                    # (Bp, Lp, Cin) bf16

    kernel = functools.partial(network_kernel, L=L, Lm=Lm, use_roll=use_roll)
    out = pl.pallas_call(
        kernel,
        out_shape=jax.ShapeDtypeStruct((Bp, 1, nc_p), jnp.float32),
        grid=(Bp // TB,),
        in_specs=[
            pl.BlockSpec((TB, Lp, Cin), lambda b: (b, 0, 0)),    # activations tile
            pl.BlockSpec((K, Cin, Cout), lambda b: (0, 0, 0)),   # conv weight (shared)
            pl.BlockSpec((1, Cout), lambda b: (0, 0)),           # conv bias
            pl.BlockSpec((Cout, nc_p), lambda b: (0, 0)),        # classifier weight
            pl.BlockSpec((1, nc_p), lambda b: (0, 0)),           # classifier bias
        ],
        out_specs=pl.BlockSpec((TB, 1, nc_p), lambda b: (b, 0, 0)),
        compiler_params=pltpu.CompilerParams(
            dimension_semantics=("parallel",),
            vmem_limit_bytes=_VMEM_LIMIT_BYTES,
        ),
    )(x, prep["w_conv"], prep["b_conv"], prep["w_cls"], prep["b_cls"])

    return out[:B, 0, :num_classes]


def reference_forward(tokens, params):
    """Pure-JAX reference in the original op order (bias + ReLU before the pool)."""
    emb = params["emb"].astype(jnp.bfloat16)[tokens]              # (B, L, Cin)
    x = jnp.pad(emb, ((0, 0), (1, 1), (0, 0)))                    # (B, L+2, Cin)
    w = params["w_conv"].astype(jnp.bfloat16)                     # (3, Cin, Cout)
    L = tokens.shape[1]
    y = sum(
        jnp.einsum("blc,co->blo", x[:, t:t + L, :], w[t],
                   preferred_element_type=jnp.float32)
        for t in range(w.shape[0]))
    y = jnp.maximum(y + params["b_conv"][None, :, :], 0.0)        # conv bias + ReLU
    pooled = jnp.max(y, axis=1)                                   # AdaptiveMaxPool1d(1)
    logits = jnp.dot(pooled.astype(jnp.bfloat16),
                     params["w_cls"].astype(jnp.bfloat16),
                     preferred_element_type=jnp.float32)
    return logits + params["b_cls"]


if __name__ == "__main__":
    # Shapes consistent with the module (300-d navec embeddings, 256-d TokenCNN).
    VOCAB, CIN, COUT, NUM_CLASSES = 64, 300, 256, 4

    key = jax.random.PRNGKey(0)
    k_emb, k_wc, k_bc, k_wl, k_bl, k_t1, k_t2 = jax.random.split(key, 7)

    params = {
        "emb":    jax.random.normal(k_emb, (VOCAB, CIN), jnp.float32) * 0.1,
        "w_conv": jax.random.normal(k_wc, (3, CIN, COUT), jnp.float32) * 0.02,
        "b_conv": jax.random.normal(k_bc, (1, COUT), jnp.float32) * 0.01,
        "w_cls":  jax.random.normal(k_wl, (COUT, NUM_CLASSES), jnp.float32) * 0.1,
        "b_cls":  jax.random.normal(k_bl, (1, NUM_CLASSES), jnp.float32) * 0.05,
    }
    prep = prepare_params(params)        # hoisted one-time layout prep

    # Case 1: short sequence -> sliced-tap conv path, single grid step.
    tokens1 = jax.random.randint(k_t1, (2, 16), 0, VOCAB, dtype=jnp.int32)
    out1 = network_forward(tokens1, prep)
    jax.block_until_ready(out1)
    assert out1.shape == (2, NUM_CLASSES) and out1.dtype == jnp.float32
    ref1 = reference_forward(tokens1, params)
    err1 = float(jnp.max(jnp.abs(out1 - ref1)))
    assert bool(jnp.allclose(out1, ref1, rtol=1e-3, atol=1e-3)), f"case1 max err {err1}"

    # Case 2: longer sequence -> roll-combine conv path, 2 grid steps + batch padding.
    tokens2 = jax.random.randint(k_t2, (21, 96), 0, VOCAB, dtype=jnp.int32)
    out2 = network_forward(tokens2, prep)
    jax.block_until_ready(out2)
    assert out2.shape == (21, NUM_CLASSES) and out2.dtype == jnp.float32
    ref2 = reference_forward(tokens2, params)
    err2 = float(jnp.max(jnp.abs(out2 - ref2)))
    assert bool(jnp.allclose(out2, ref2, rtol=1e-3, atol=1e-3)), f"case2 max err {err2}"

    print("KERNEL_OK")
</pallas_src>

<mosaic_0001>
module attributes {stable_mosaic.version = 11 : i64} {
  func.func @network_kernel(%arg0: i32, %arg1: memref<2x24x300xbf16, #tpu.memory_space<vmem>>, %arg2: memref<3x300x256xbf16, #tpu.memory_space<vmem>>, %arg3: memref<1x256xf32, #tpu.memory_space<vmem>>, %arg4: memref<256x128xbf16, #tpu.memory_space<vmem>>, %arg5: memref<1x128xf32, #tpu.memory_space<vmem>>, %arg6: memref<2x1x128xf32, #tpu.memory_space<vmem>>) attributes {dimension_semantics = [#tpu.dimension_semantics<parallel>], iteration_bounds = array<i64: 1>, scalar_prefetch = 0 : i64, scratch_operands = 0 : i64, tpu.core_type = #tpu.core_type<tc>, window_params = [{transform_indices = @transform_0, window_bounds = array<i64: 2, 24, 300>}, {pipeline_mode = #tpu.pipeline_mode<synchronous>, transform_indices = @transform_1, window_bounds = array<i64: 3, 300, 256>}, {pipeline_mode = #tpu.pipeline_mode<synchronous>, transform_indices = @transform_2, window_bounds = array<i64: 1, 256>}, {pipeline_mode = #tpu.pipeline_mode<synchronous>, transform_indices = @transform_3, window_bounds = array<i64: 256, 128>}, {pipeline_mode = #tpu.pipeline_mode<synchronous>, transform_indices = @transform_4, window_bounds = array<i64: 1, 128>}, {transform_indices = @transform_5, window_bounds = array<i64: 2, 1, 128>}]} {
    %c0 = arith.constant 0 : index
    %c0_0 = arith.constant 0 : index
    %c0_1 = arith.constant 0 : index
    %0 = vector.load %arg1[%c0, %c0_0, %c0_1] : memref<2x24x300xbf16, #tpu.memory_space<vmem>>, vector<2x24x300xbf16>
    %1 = vector.extract_strided_slice %0 {offsets = [0, 0, 0], sizes = [2, 16, 300], strides = [1, 1, 1]} : vector<2x24x300xbf16> to vector<2x16x300xbf16>
    %2 = vector.shape_cast %1 : vector<2x16x300xbf16> to vector<32x300xbf16>
    %c0_2 = arith.constant 0 : index
    %c0_3 = arith.constant 0 : index
    %c0_4 = arith.constant 0 : index
    %3 = vector.load %arg2[%c0_2, %c0_3, %c0_4] : memref<3x300x256xbf16, #tpu.memory_space<vmem>>, vector<1x300x256xbf16>
    %4 = vector.shape_cast %3 : vector<1x300x256xbf16> to vector<300x256xbf16>
    %cst = arith.constant dense<0.000000e+00> : vector<32x256xf32>
    %5 = tpu.matmul %2, %4, %cst {dimension_numbers = #tpu.dot_dimension_numbers<[1], [0], [0], [1], [0, 0, 1, 1], [], []>} : vector<32x300xbf16>, vector<300x256xbf16>, vector<32x256xf32> -> vector<32x256xf32>
    %6 = vector.extract_strided_slice %0 {offsets = [0, 1, 0], sizes = [2, 16, 300], strides = [1, 1, 1]} : vector<2x24x300xbf16> to vector<2x16x300xbf16>
    %7 = vector.shape_cast %6 : vector<2x16x300xbf16> to vector<32x300xbf16>
    %c1 = arith.constant 1 : index
    %c0_5 = arith.constant 0 : index
    %c0_6 = arith.constant 0 : index
    %8 = vector.load %arg2[%c1, %c0_5, %c0_6] : memref<3x300x256xbf16, #tpu.memory_space<vmem>>, vector<1x300x256xbf16>
    %9 = vector.shape_cast %8 : vector<1x300x256xbf16> to vector<300x256xbf16>
    %cst_7 = arith.constant dense<0.000000e+00> : vector<32x256xf32>
    %10 = tpu.matmul %7, %9, %cst_7 {dimension_numbers = #tpu.dot_dimension_numbers<[1], [0], [0], [1], [0, 0, 1, 1], [], []>} : vector<32x300xbf16>, vector<300x256xbf16>, vector<32x256xf32> -> vector<32x256xf32>
    %11 = arith.addf %5, %10 : vector<32x256xf32>
    %12 = vector.extract_strided_slice %0 {offsets = [0, 2, 0], sizes = [2, 16, 300], strides = [1, 1, 1]} : vector<2x24x300xbf16> to vector<2x16x300xbf16>
    %13 = vector.shape_cast %12 : vector<2x16x300xbf16> to vector<32x300xbf16>
    %c2 = arith.constant 2 : index
    %c0_8 = arith.constant 0 : index
    %c0_9 = arith.constant 0 : index
    %14 = vector.load %arg2[%c2, %c0_8, %c0_9] : memref<3x300x256xbf16, #tpu.memory_space<vmem>>, vector<1x300x256xbf16>
    %15 = vector.shape_cast %14 : vector<1x300x256xbf16> to vector<300x256xbf16>
    %cst_10 = arith.constant dense<0.000000e+00> : vector<32x256xf32>
    %16 = tpu.matmul %13, %15, %cst_10 {dimension_numbers = #tpu.dot_dimension_numbers<[1], [0], [0], [1], [0, 0, 1, 1], [], []>} : vector<32x300xbf16>, vector<300x256xbf16>, vector<32x256xf32> -> vector<32x256xf32>
    %17 = arith.addf %11, %16 : vector<32x256xf32>
    %18 = vector.shape_cast %17 : vector<32x256xf32> to vector<2x16x256xf32>
    %cst_11 = arith.constant dense<0xFF800000> : vector<2x256xf32>
    %19 = vector.multi_reduction <maximumf>, %18, %cst_11 [1] : vector<2x16x256xf32> to vector<2x256xf32>
    %c0_12 = arith.constant 0 : index
    %c0_13 = arith.constant 0 : index
    %20 = vector.load %arg3[%c0_12, %c0_13] : memref<1x256xf32, #tpu.memory_space<vmem>>, vector<1x256xf32>
    %21 = vector.broadcast %20 : vector<1x256xf32> to vector<2x256xf32>
    %22 = arith.addf %19, %21 : vector<2x256xf32>
    %cst_14 = arith.constant 0.000000e+00 : f32
    %23 = vector.broadcast %cst_14 : f32 to vector<2x256xf32>
    %24 = arith.maximumf %22, %23 : vector<2x256xf32>
    %25 = arith.truncf %24 : vector<2x256xf32> to vector<2x256xbf16>
    %c0_15 = arith.constant 0 : index
    %c0_16 = arith.constant 0 : index
    %26 = vector.load %arg4[%c0_15, %c0_16] : memref<256x128xbf16, #tpu.memory_space<vmem>>, vector<256x128xbf16>
    %cst_17 = arith.constant dense<0.000000e+00> : vector<2x128xf32>
    %27 = tpu.matmul %25, %26, %cst_17 {dimension_numbers = #tpu.dot_dimension_numbers<[1], [0], [0], [1], [0, 0, 1, 1], [], []>} : vector<2x256xbf16>, vector<256x128xbf16>, vector<2x128xf32> -> vector<2x128xf32>
    %c0_18 = arith.constant 0 : index
    %c0_19 = arith.constant 0 : index
    %28 = vector.load %arg5[%c0_18, %c0_19] : memref<1x128xf32, #tpu.memory_space<vmem>>, vector<1x128xf32>
    %29 = vector.broadcast %28 : vector<1x128xf32> to vector<2x128xf32>
    %30 = arith.addf %27, %29 : vector<2x128xf32>
    %31 = vector.shape_cast %30 : vector<2x128xf32> to vector<2x1x128xf32>
    %c0_20 = arith.constant 0 : index
    %c0_21 = arith.constant 0 : index
    %c0_22 = arith.constant 0 : index
    %32 = vector.load %arg6[%c0_20, %c0_21, %c0_22] : memref<2x1x128xf32, #tpu.memory_space<vmem>>, vector<2x1x128xf32>
    tpu.vector_store %arg6[%c0_20, %c0_21, %c0_22], %31 {strides = array<i32>} : memref<2x1x128xf32, #tpu.memory_space<vmem>>, vector<2x1x128xf32>,
    return
  }
  func.func @transform_0(%arg0: i32) -> (i32, i32, i32) {
    %c0_i32 = arith.constant 0 : i32
    %c0_i32_0 = arith.constant 0 : i32
    %c0_i32_1 = arith.constant 0 : i32
    return %arg0, %c0_i32, %c0_i32_0 : i32, i32, i32
  }
  func.func @transform_1(%arg0: i32) -> (i32, i32, i32) {
    %c0_i32 = arith.constant 0 : i32
    %c0_i32_0 = arith.constant 0 : i32
    %c0_i32_1 = arith.constant 0 : i32
    %c0_i32_2 = arith.constant 0 : i32
    return %c0_i32, %c0_i32_0, %c0_i32_1 : i32, i32, i32
  }
  func.func @transform_2(%arg0: i32) -> (i32, i32) {
    %c0_i32 = arith.constant 0 : i32
    %c0_i32_0 = arith.constant 0 : i32
    %c0_i32_1 = arith.constant 0 : i32
    return %c0_i32, %c0_i32_0 : i32, i32
  }
  func.func @transform_3(%arg0: i32) -> (i32, i32) {
    %c0_i32 = arith.constant 0 : i32
    %c0_i32_0 = arith.constant 0 : i32
    %c0_i32_1 = arith.constant 0 : i32
    return %c0_i32, %c0_i32_0 : i32, i32
  }
  func.func @transform_4(%arg0: i32) -> (i32, i32) {
    %c0_i32 = arith.constant 0 : i32
    %c0_i32_0 = arith.constant 0 : i32
    %c0_i32_1 = arith.constant 0 : i32
    return %c0_i32, %c0_i32_0 : i32, i32
  }
  func.func @transform_5(%arg0: i32) -> (i32, i32, i32) {
    %c0_i32 = arith.constant 0 : i32
    %c0_i32_0 = arith.constant 0 : i32
    %c0_i32_1 = arith.constant 0 : i32
    return %arg0, %c0_i32, %c0_i32_0 : i32, i32, i32
  }
}

</mosaic_0001>

<bundles_post_ra>
// kernel: tpu_custom_call.1
= control target key start
LH: loop header
LB: loop body
LE: loop exit
PB: predicated region body
PF: predicated region fallthrough
CT: control target
= control target key end

     0   :  { %10 = vsyncpa [#allocation3], 0  ;;  %s2762_s0 = inlined_call_operand.hbm [shape: bf16[2,24,300], index: 0, kind: input, shape index: {}]   ;;  %s2763_s1 = inlined_call_operand.hbm [shape: bf16[3,300,256], index: 1, kind: input, shape index: {}]   ;;  %s2764_s2 = inlined_call_operand.hbm [shape: f32[1,256], index: 2, kind: input, shape index: {}]   ;;  %s2765_s3 = inlined_call_operand.hbm [shape: bf16[256,128], index: 3, kind: input, shape index: {}]   ;;  %s2766_s4 = inlined_call_operand.vmem [shape: f32[1,128], index: 4, kind: input, shape index: {}]   ;;  %s2767_s5 = inlined_call_operand.hbm [shape: f32[2,1,128], index: 5, kind: output, shape index: {}]  }
   0x1   :  { %11 = vsyncpa [#allocation6], 0 }
   0x2   :  { %12 = vsyncpa [#allocation9], 0  ;;  %s31_s20 = sshll.u32 %s2763_s1, 4  ;;  %s32_s20 = int_to_ptr.hbm [resolvable:$true] %s31_s20 }
   0x3   :  { %13 = vsyncpa [#allocation4], 0  ;;  %s2459_s21 = smov [#allocation5]   ;;  %s18_s25 = sshll.u32 %s2762_s0, 4  ;;  %s19_s25 = int_to_ptr.hbm [resolvable:$true] %s18_s25 }
   0x4   :  { %s33_s22 = sshll.u32 %s2459_s21, 4  ;;  %s2460_s26 = smov 128   ;;  %s34_s22 = int_to_ptr.vmem [resolvable:$true] %s33_s22 }
   0x5   :  { %s2461_s27 = smov 8   ;;  %s2462_s28 = smov [#allocation2]  }
   0x6   :  { %39 = dma.hbm_to_vmem [thread:$0]  %s32_s20, 14592, %s34_s22, [#allocation6], %s2460_s26, %s2460_s26, %s2461_s27  }
   0x7   :  { %s20_s29 = sshll.u32 %s2462_s28, 4  ;;  %s2463_s30 = smov 192   ;;  %s21_s29 = int_to_ptr.vmem [resolvable:$true] %s20_s29 }
   0x8   :  { %s2464_s6 = smov 12   ;;  %s45_s8 = sshll.u32 %s2764_s2, 4  ;;  %s46_s8 = int_to_ptr.hbm [resolvable:$true] %s45_s8 }
   0x9   :  { %26 = dma.hbm_to_vmem [thread:$0]  %s19_s25, 1152, %s21_s29, [#allocation3], %s2463_s30, %s2463_s30, %s2464_s6  }
   0xa   :  { %s2465_s9 = smov [#allocation7]   ;;  %s55_s12 = sshll.u32 %s2765_s3, 4  ;;  %s56_s12 = int_to_ptr.hbm [resolvable:$true] %s55_s12 }
   0xb   :  { %s47_s10 = sshll.u32 %s2465_s9, 4  ;;  %s2466_s13 = smov [#allocation8]   ;;  %s48_s10 = int_to_ptr.vmem [resolvable:$true] %s47_s10 }
   0xc   :  { %50 = dma.hbm_to_vmem [thread:$0]  %s46_s8, 32, %s48_s10, [#allocation6]  }
   0xd   :  { %s57_s14 = sshll.u32 %s2466_s13, 4  ;;  %s2467_s15 = smov 64   ;;  %s58_s14 = int_to_ptr.vmem [resolvable:$true] %s57_s14 }
   0xe   :  { %s2468_s16 = smov 4  }
   0xf   :  { %63 = dma.hbm_to_vmem [thread:$0]  %s56_s12, 2048, %s58_s14, [#allocation9], %s2467_s15, %s2467_s15, %s2468_s16  }
  0x10   :  { %2451 = dma.done.wait [#allocation3], 1152  }
  0x11   :  { %2452 = vsyncadd [#allocation3], 4294966144 }
  0x12   :  { %2453 = dma.done.wait [#allocation6], 14624  }
  0x13   :  { %2454 = vsyncadd [#allocation6], 4294952672 }
  0x14   :  { %2455 = dma.done.wait [#allocation9], 2048  }
  0x15   :  { %2456 = vsyncadd [#allocation9], 4294965248  ;;  %vm488_vm0 = vcmask 1045504   ;;  %v1676_v0 = vld [vmem:[#allocation5 + $0x1a0] sm:$0xf]  ;;  %v2526_v59 = vld [vmem:[#allocation2] sm:$0xff] }
  0x16   :  { %v2237_v1 = vld [vmem:[#allocation5 + $0x1a4] sm:$0xf0]  ;;  %v1740_v2 = vld [vmem:[#allocation5 + $0x220] sm:$0xf]  ;;  %v2236_v5 = vld [vmem:[#allocation5 + $0x1a4] sm:$0xf] }
  0x17   :  { %v1677_v3 = vor.u32 %v2237_v1, %v1676_v0  ;;  %v2253_v4 = vld [vmem:[#allocation5 + $0x224] sm:$0xf0]  ;;  %v1678_v6 = vld [vmem:[#allocation5 + $0x1a8] sm:$0xf0]  ;;  %v1764_v9 = vld [vmem:[#allocation5 + $0x250] sm:$0xf] }
  0x18   :  { %v1741_v7 = vor.u32 %v2253_v4, %v1740_v2  ;;  %v1681_v8 = vor.u32 %v2236_v5, %v1678_v6  ;;  %v2259_v10 = vld [vmem:[#allocation5 + $0x254] sm:$0x30]  ;;  %v1668_v11 = vld [vmem:[#allocation5 + $0x190] sm:$0xf]  ;;  %vm133_vm1 = vsmask.f32 3328 }
  0x19   :  { %495 = vmatpush.bf16.msra.mxu0 %v1677_v3  ;;  %v1765_v12 = vor.u32 %v2259_v10, %v1764_v9  ;;  %v2235_v13 = vld [vmem:[#allocation5 + $0x194] sm:$0xf0]  ;;  %v1732_v14 = vld [vmem:[#allocation5 + $0x210] sm:$0xf]  ;;  %vm134_vm2 = vsmask.f32 7440 }
  0x1a   :  { %v2251_v15 = vld [vmem:[#allocation5 + $0x214] sm:$0xf0]  ;;  %514 = vmatpush.bf16.msra.mxu1 %v1741_v7  ;;  %552 = vmatpush.bf16.msra.mxu3 %v1681_v8  ;;  %v1669_v16 = vor.u32 %v2235_v13, %v1668_v11  ;;  %v2234_v18 = vld [vmem:[#allocation5 + $0x194] sm:$0xf]  ;;  %v1670_v19 = vld [vmem:[#allocation5 + $0x198] sm:$0xf0] }
  0x1b   :  { %v1733_v17 = vor.u32 %v2251_v15, %v1732_v14  ;;  %v1756_v20 = vld [vmem:[#allocation5 + $0x240] sm:$0xf]  ;;  %v490_v21 = vsel %vm488_vm0, %v1765_v12, 0  ;;  %v1673_v22 = vor.u32 %v2234_v18, %v1670_v19  ;;  %v2257_v23 = vld [vmem:[#allocation5 + $0x244] sm:$0xf0]  ;;  %vm2530_vm3 = vmor %vm133_vm1, %vm134_vm2  ;;  %vm481_vm4 = vcmask 359424  }
  0x1c   :  { %v1660_v24 = vld [vmem:[#allocation5 + $0x180] sm:$0xf]  ;;  %538 = vmatpush.bf16.msra.mxu2 %v490_v21  ;;  %v1757_v25 = vor.u32 %v2257_v23, %v1756_v20  ;;  %v2233_v26 = vld [vmem:[#allocation5 + $0x184] sm:$0xf0]  ;;  %v2232_v30 = vld [vmem:[#allocation5 + $0x184] sm:$0xf] }
  0x1d   :  { %v1724_v27 = vld [vmem:[#allocation5 + $0x200] sm:$0xf]  ;;  %v2249_v28 = vld [vmem:[#allocation5 + $0x204] sm:$0xf0]  ;;  %496 = vmatpush.bf16.msra.mxu0 %v1669_v16  ;;  %v1661_v29 = vor.u32 %v2233_v26, %v1660_v24  ;;  %v1662_v31 = vld [vmem:[#allocation5 + $0x188] sm:$0xf0] }
  0x1e   :  { %v1748_v32 = vld [vmem:[#allocation5 + $0x230] sm:$0xf]  ;;  %515 = vmatpush.bf16.msra.mxu1 %v1733_v17  ;;  %553 = vmatpush.bf16.msra.mxu3 %v1673_v22  ;;  %v1725_v33 = vor.u32 %v2249_v28, %v1724_v27  ;;  %v1665_v34 = vor.u32 %v2232_v30, %v1662_v31  ;;  %v2255_v35 = vld [vmem:[#allocation5 + $0x234] sm:$0xf0]  ;;  %v2515_v40 = vld [vmem:[#allocation2 + $0x8] sm:$0xf] }
  0x1f   :  { %v1652_v36 = vld [vmem:[#allocation5 + $0x170] sm:$0xf]  ;;  %v2231_v37 = vld [vmem:[#allocation5 + $0x174] sm:$0xf0]  ;;  %v1749_v41 = vor.u32 %v2255_v35, %v1748_v32  ;;  %v2517_v42 = vld [vmem:[#allocation2 + $0x14] sm:$0xf] }
  0x20   :  { %v1716_v38 = vld [vmem:[#allocation5 + $0x1f0] sm:$0xf]  ;;  %v2247_v39 = vld [vmem:[#allocation5 + $0x1f4] sm:$0xf0]  ;;  %539 = vmatpush.bf16.msra.mxu2 %v1757_v25  ;;  %v151_v44 = vshrl.u32 %v2515_v40, 16  ;;  %v154_v45 = vshll.u32 %v2515_v40, 16  ;;  %v1653_v46 = vor.u32 %v2231_v37, %v1652_v36 }
  0x21   :  { %v2519_v43 = vld [vmem:[#allocation2 + $0x20] sm:$0xf]  ;;  %497 = vmatpush.bf16.msra.mxu0 %v1661_v29  ;;  %v160_v47 = vshll.u32 %v2517_v42, 16  ;;  %v174_v48 = vshrl.u32 %v2517_v42, 16  ;;  %v2230_v50 = vld [vmem:[#allocation5 + $0x174] sm:$0xf]  ;;  %v1717_v51 = vor.u32 %v2247_v39, %v1716_v38 }
  0x22   :  { %v180_v49 = vshll.u32 %v2519_v43, 16  ;;  %516 = vmatpush.bf16.msra.mxu1 %v1725_v33  ;;  %554 = vmatpush.bf16.msra.mxu3 %v1665_v34  ;;  %v153_v52 = vrot.slane %v151_v44, 4  ;;  %v156_v53 = vrot.slane %v154_v45, 5  ;;  %v1654_v54 = vld [vmem:[#allocation5 + $0x178] sm:$0xf0]  ;;  %v137_v11 = vshrl.u32 %v2526_v59, 16 }
  0x23   :  { %v162_v55 = vrot.slane %v160_v47, 5  ;;  %v176_v56 = vrot.slane %v174_v48, 4  ;;  %v1657_v57 = vor.u32 %v2230_v50, %v1654_v54  ;;  %v2252_v58 = vld [vmem:[#allocation5 + $0x224] sm:$0xf]  ;;  %v1742_v63 = vld [vmem:[#allocation5 + $0x228] sm:$0xf0] }
  0x24   :  { %540 = vmatpush.bf16.msra.mxu2 %v1749_v41  ;;  %v157_v61 = vor.u32 %v156_v53, %v153_v52  ;;  %v182_v62 = vrot.slane %v180_v49, 5  ;;  %v1644_v0 = vld [vmem:[#allocation5 + $0x160] sm:$0xf]  ;;  %v1745_v2 = vor.u32 %v2252_v58, %v1742_v63  ;;  %v2229_v3 = vld [vmem:[#allocation5 + $0x164] sm:$0xf0]  ;;  %v140_v16 = vshll.u32 %v2526_v59, 16 }
  0x25   :  { %498 = vmatpush.bf16.msra.mxu0 %v1653_v46  ;;  %v177_v1 = vor.u32 %v176_v56, %v162_v55  ;;  %v1708_v4 = vld [vmem:[#allocation5 + $0x1e0] sm:$0xf]  ;;  %v2245_v5 = vld [vmem:[#allocation5 + $0x1e4] sm:$0xf0]  ;;  %v1645_v7 = vor.u32 %v2229_v3, %v1644_v0  ;;  %v2228_v9 = vld [vmem:[#allocation5 + $0x164] sm:$0xf] }
  0x26   :  { %517 = vmatpush.bf16.msra.mxu1 %v1717_v51  ;;  %v158_v6 = vrot.slane %v157_v61, 4  ;;  %555 = vmatpush.bf16.msra.mxu3 %v1657_v57  ;;  %v1709_v8 = vor.u32 %v2245_v5, %v1708_v4  ;;  %v1646_v10 = vld [vmem:[#allocation5 + $0x168] sm:$0xf0]  ;;  %v2250_v14 = vld [vmem:[#allocation5 + $0x214] sm:$0xf]  ;;  %v2546_v53 = vld [vmem:[#allocation2 + $0xc] sm:$0xff] }
  0x27   :  { %v178_v12 = vrot.slane %v177_v1, 4  ;;  %v1649_v13 = vor.u32 %v2228_v9, %v1646_v10  ;;  %v1734_v15 = vld [vmem:[#allocation5 + $0x218] sm:$0xf0]  ;;  %v1636_v19 = vld [vmem:[#allocation5 + $0x150] sm:$0xf]  ;;  %v139_v3 = vrot.slane %v137_v11, 4 }
  0x28   :  { %571 = vmatpush.bf16.msrb.mxu2 %v1745_v2  ;;  %v163_v17 = vsel %vm2530_vm3, %v158_v6, %v162_v55  ;;  %v1737_v18 = vor.u32 %v2250_v14, %v1734_v15  ;;  %v2227_v20 = vld [vmem:[#allocation5 + $0x154] sm:$0xf0]  ;;  %v1700_v21 = vld [vmem:[#allocation5 + $0x1d0] sm:$0xf]  ;;  %v2226_v26 = vld [vmem:[#allocation5 + $0x154] sm:$0xf] }
  0x29   :  { %v183_v22 = vsel %vm2530_vm3, %v178_v12, %v182_v62  ;;  %v273_v23 = vunpack.c.l.b16 %v163_v17  ;;  %499 = vmatpush.bf16.msra.mxu0 %v1645_v7  ;;  %v1637_v24 = vor.u32 %v2227_v20, %v1636_v19  ;;  %v2243_v25 = vld [vmem:[#allocation5 + $0x1d4] sm:$0xf0]  ;;  %v1638_v27 = vld [vmem:[#allocation5 + $0x158] sm:$0xf0]  ;;  %v2248_v30 = vld [vmem:[#allocation5 + $0x204] sm:$0xf] }
  0x2a   :  { %v276_v28 = vunpack.c.l.b16 %v183_v22  ;;  %518 = vmatpush.bf16.msra.mxu1 %v1709_v8  ;;  %556 = vmatpush.bf16.msra.mxu3 %v1649_v13  ;;  %v1701_v29 = vor.u32 %v2243_v25, %v1700_v21  ;;  %v1726_v31 = vld [vmem:[#allocation5 + $0x208] sm:$0xf0]  ;;  %v1628_v32 = vld [vmem:[#allocation5 + $0x140] sm:$0xf]  ;;  %v1641_v33 = vor.u32 %v2226_v26, %v1638_v27  ;;  %v2225_v35 = vld [vmem:[#allocation5 + $0x144] sm:$0xf0] }
  0x2b   :  { %v1729_v34 = vor.u32 %v2248_v30, %v1726_v31  ;;  %v1692_v36 = vld [vmem:[#allocation5 + $0x1c0] sm:$0xf]  ;;  %v2241_v37 = vld [vmem:[#allocation5 + $0x1c4] sm:$0xf0]  ;;  %v2224_v39 = vld [vmem:[#allocation5 + $0x144] sm:$0xf]  ;;  %v1629_v45 = vor.u32 %v2225_v35, %v1628_v32 }
  0x2c   :  { %572 = vmatpush.bf16.msrb.mxu2 %v1737_v18  ;;  %v2540_v38 = vpack.c.b16 %v276_v28, %v273_v23  ;;  %v1630_v41 = vld [vmem:[#allocation5 + $0x148] sm:$0xf0]  ;;  %v2246_v44 = vld [vmem:[#allocation5 + $0x1f4] sm:$0xf]  ;;  %v1718_v46 = vld [vmem:[#allocation5 + $0x1f8] sm:$0xf0]  ;;  %v1693_v49 = vor.u32 %v2241_v37, %v1692_v36 }
  0x2d   :  { %500 = vmatpush.bf16.msra.mxu0 %v1637_v24  ;;  %v1620_v47 = vld [vmem:[#allocation5 + $0x130] sm:$0xf]  ;;  %v2223_v48 = vld [vmem:[#allocation5 + $0x134] sm:$0xf0]  ;;  %v2544_v52 = vld [vmem:[#allocation2 + $0x2c] sm:$0xf]  ;;  %v1633_v54 = vor.u32 %v2224_v39, %v1630_v41  ;;  %v1721_v55 = vor.u32 %v2246_v44, %v1718_v46 }
  0x2e   :  { %1770 = vmatmul.msk.bf16.vlgmr.msra.gmra.mxu2 %vm481_vm4, %v2540_v38  ;;  %519 = vmatpush.bf16.msra.mxu1 %v1701_v29  ;;  %v1684_v50 = vld [vmem:[#allocation5 + $0x1b0] sm:$0xf]  ;;  %v2239_v51 = vld [vmem:[#allocation5 + $0x1b4] sm:$0xf0]  ;;  %v2550_v57 = vld [vmem:[#allocation2 + $0x44] sm:$0xf]  ;;  %v1621_v4 = vor.u32 %v2223_v48, %v1620_v47 }
  0x2f   :  { %557 = vmatpush.bf16.msra.mxu3 %v1641_v33  ;;  %v2548_v56 = vld [vmem:[#allocation2 + $0x38] sm:$0xf]  ;;  %v199_v58 = vshrl.u32 %v2544_v52, 16  ;;  %v202_v61 = vshll.u32 %v2544_v52, 16  ;;  %v228_v1 = vshll.u32 %v2550_v57, 16  ;;  %v1685_v5 = vor.u32 %v2239_v51, %v1684_v50  ;;  %v2566_v41 = vld [vmem:[#allocation2 + $0x24] sm:$0xff] }
  0x30   :  { %573 = vmatpush.bf16.msrb.mxu2 %v1729_v34  ;;  %v2554_v62 = vld [vmem:[#allocation2 + $0x18] sm:$0xff]  ;;  %v208_v63 = vshll.u32 %v2548_v56, 16  ;;  %v222_v0 = vshrl.u32 %v2548_v56, 16  ;;  %v1622_v8 = vld [vmem:[#allocation5 + $0x138] sm:$0xf0]  ;;  %v142_v11 = vrot.slane %v140_v16, 5 }
  0x31   :  { %v2222_v2 = vld [vmem:[#allocation5 + $0x134] sm:$0xf]  ;;  %501 = vmatpush.bf16.msra.mxu0 %v1629_v45  ;;  %v201_v6 = vrot.slane %v199_v58, 4  ;;  %v204_v7 = vrot.slane %v202_v61, 5  ;;  %v2244_v9 = vld [vmem:[#allocation5 + $0x1e4] sm:$0xf] }
  0x32   :  { %520 = vmatpush.bf16.msra.mxu1 %v1693_v49  ;;  %v210_v10 = vrot.slane %v208_v63, 5  ;;  %v224_v12 = vrot.slane %v222_v0, 4  ;;  %v230_v13 = vrot.slane %v228_v1, 5  ;;  %v1625_v14 = vor.u32 %v2222_v2, %v1622_v8  ;;  %v1710_v15 = vld [vmem:[#allocation5 + $0x1e8] sm:$0xf0]  ;;  %s2469_s17 = smov [#allocation10]  }
  0x33   :  { %558 = vmatpush.bf16.msra.mxu3 %v1633_v54  ;;  %v205_v17 = vor.u32 %v204_v7, %v201_v6  ;;  %v1713_v18 = vor.u32 %v2244_v9, %v1710_v15  ;;  %v146_v19 = vshll.u32 %v2546_v53, 16  ;;  %v2242_v20 = vld [vmem:[#allocation5 + $0x1d4] sm:$0xf]  ;;  %v164_v22 = vshrl.u32 %v2546_v53, 16  ;;  %v1702_v24 = vld [vmem:[#allocation5 + $0x1d8] sm:$0xf0] }
  0x34   :  { %574 = vmatpush.bf16.msrb.mxu2 %v1721_v55  ;;  %v225_v21 = vor.u32 %v224_v12, %v210_v10  ;;  %v170_v23 = vshll.u32 %v2554_v62, 16  ;;  %v1856_v25 = vld [vmem:[#allocation5 + $0x70] sm:$0xf]  ;;  %v143_v27 = vor.u32 %v142_v11, %v139_v3  ;;  %v2199_v29 = vld [vmem:[#allocation5 + $0x74] sm:$0xf0]  ;;  %v1705_v35 = vor.u32 %v2242_v20, %v1702_v24  ;;  %s1601_s18 = sshll.u32 %s2469_s17, 4  ;;  %s1602_s18 = int_to_ptr.vmem [resolvable:$true] %s1601_s18 }
  0x35   :  { %502 = vmatpush.bf16.msra.mxu0 %v1621_v4  ;;  %v206_v26 = vrot.slane %v205_v17, 4  ;;  %v148_v28 = vrot.slane %v146_v19, 5  ;;  %v166_v31 = vrot.slane %v164_v22, 4  ;;  %v1920_v16 = vld [vmem:[#allocation5 + $0xf0] sm:$0xf]  ;;  %v1857_v36 = vor.u32 %v2199_v29, %v1856_v25  ;;  %s1603_s21 = sshll.u32 %s2767_s5, 4  ;;  %s1604_s21 = int_to_ptr.hbm [resolvable:$true] %s1603_s21 }
  0x36   :  { %521 = vmatpush.bf16.msra.mxu1 %v1685_v5  ;;  %v226_v30 = vrot.slane %v225_v21, 4  ;;  %v172_v32 = vrot.slane %v170_v23, 5  ;;  %v144_v34 = vrot.slane %v143_v27, 4  ;;  %v2215_v37 = vld [vmem:[#allocation5 + $0xf4] sm:$0xf0]  ;;  %v185_v4 = vshrl.u32 %v2566_v41, 16 }
  0x37   :  { %v211_v33 = vsel %vm2530_vm3, %v206_v26, %v210_v10  ;;  %559 = vmatpush.bf16.msra.mxu3 %v1625_v14  ;;  %v2240_v39 = vld [vmem:[#allocation5 + $0x1c4] sm:$0xf]  ;;  %v167_v46 = vor.u32 %v166_v31, %v148_v28  ;;  %v1921_v47 = vor.u32 %v2215_v37, %v1920_v16  ;;  %v1694_v48 = vld [vmem:[#allocation5 + $0x1c8] sm:$0xf0]  ;;  %v1848_v49 = vld [vmem:[#allocation5 + $0x60] sm:$0xf] }
  0x38   :  { %575 = vmatpush.bf16.msrb.mxu2 %v1713_v18  ;;  %v231_v44 = vsel %vm2530_vm3, %v226_v30, %v230_v13  ;;  %v279_v45 = vunpack.c.l.b16 %v211_v33  ;;  %v2197_v50 = vld [vmem:[#allocation5 + $0x64] sm:$0xf0]  ;;  %v149_v54 = vsel %vm2530_vm3, %v144_v34, %v148_v28  ;;  %v1912_v58 = vld [vmem:[#allocation5 + $0xe0] sm:$0xf]  ;;  %v2238_v63 = vld [vmem:[#allocation5 + $0x1b4] sm:$0xf]  ;;  %v1697_v8 = vor.u32 %v2240_v39, %v1694_v48 }
  0x39   :  { %v282_v51 = vunpack.c.l.b16 %v231_v44  ;;  %v1849_v55 = vor.u32 %v2197_v50, %v1848_v49  ;;  %v2213_v61 = vld [vmem:[#allocation5 + $0xe4] sm:$0xf0]  ;;  %v168_v0 = vrot.slane %v167_v46, 4  ;;  %v1686_v2 = vld [vmem:[#allocation5 + $0x1b8] sm:$0xf0]  ;;  %v271_v6 = vunpack.c.l.b16 %v149_v54  ;;  %v2579_v21 = vld [vmem:[#allocation2 + $0x3c] sm:$0xff] }
  0x3a   :  { %839 = vmatpush.bf16.msrb.mxu1 %v1857_v36  ;;  %v1913_v1 = vor.u32 %v2213_v61, %v1912_v58  ;;  %v1840_v3 = vld [vmem:[#allocation5 + $0x50] sm:$0xf]  ;;  %v272_v7 = vunpack.c.h.b16 %v149_v54  ;;  %v2195_v9 = vld [vmem:[#allocation5 + $0x54] sm:$0xf0]  ;;  %v2577_v14 = vld [vmem:[#allocation2 + $0x30] sm:$0xff]  ;;  %v1689_v18 = vor.u32 %v2238_v63, %v1686_v2  ;;  %v187_v25 = vrot.slane %v185_v4, 4 }
  0x3b   :  { %858 = vmatpush.bf16.msrb.mxu3 %v1921_v47  ;;  %v2573_v5 = vpack.c.b16 %v282_v51, %v279_v45  ;;  %v1904_v10 = vld [vmem:[#allocation5 + $0xd0] sm:$0xf]  ;;  %v2211_v12 = vld [vmem:[#allocation5 + $0xd4] sm:$0xf0]  ;;  %v173_v13 = vsel %vm2530_vm3, %v168_v0, %v172_v32  ;;  %v1841_v11 = vor.u32 %v2195_v9, %v1840_v3  ;;  %v1944_v19 = vld [vmem:[#allocation5 + $0x120] sm:$0xf] }
  0x3c   :  { %576 = vmatpush.bf16.msrb.mxu2 %v1705_v35  ;;  %v274_v15 = vunpack.c.l.b16 %v173_v13  ;;  %v275_v17 = vunpack.c.h.b16 %v173_v13  ;;  %v2221_v20 = vld [vmem:[#allocation5 + $0x124] sm:$0x30]  ;;  %v1905_v22 = vor.u32 %v2211_v12, %v1904_v10  ;;  %v1832_v23 = vld [vmem:[#allocation5 + $0x40] sm:$0xf]  ;;  %v188_v26 = vshll.u32 %v2566_v41, 16  ;;  %s2470_s22 = smov 16  }
  0x3d   :  { %v1945_v24 = vor.u32 %v2221_v20, %v1944_v19  ;;  %v2193_v29 = vld [vmem:[#allocation5 + $0x44] sm:$0xf0]  ;;  %v1896_v30 = vld [vmem:[#allocation5 + $0xc0] sm:$0xf]  ;;  %v194_v31 = vshll.u32 %v2577_v14, 16  ;;  %v212_v32 = vshrl.u32 %v2577_v14, 16 }
  0x3e   :  { %840 = vmatpush.bf16.msrb.mxu1 %v1849_v55  ;;  %1771 = vmatmul.msk.bf16.gmra.mxu2 %vm481_vm4, %v2573_v5  ;;  %v283_v27 = vpack.c.b16 %v274_v15, %v271_v6  ;;  %v2584_v28 = vpack.c.b16 %v275_v17, %v272_v7  ;;  %v2209_v16 = vld [vmem:[#allocation5 + $0xc4] sm:$0xf0]  ;;  %v190_v33 = vrot.slane %v188_v26, 5  ;;  %v218_v34 = vshll.u32 %v2579_v21, 16  ;;  %v2258_v35 = vld [vmem:[#allocation5 + $0x254] sm:$0xf] }
  0x3f   :  { %859 = vmatpush.bf16.msrb.mxu3 %v1913_v1  ;;  %v834_v36 = vsel %vm488_vm0, %v1945_v24, 0  ;;  %v196_v37 = vrot.slane %v194_v31, 5  ;;  %v214_v39 = vrot.slane %v212_v32, 4  ;;  %v1824_v44 = vld [vmem:[#allocation5 + $0x30] sm:$0xf]  ;;  %v1833_v46 = vor.u32 %v2193_v29, %v1832_v23  ;;  %s2471_s23 = smov 1  }
  0x40   :  { %577 = vmatpush.bf16.msrb.mxu2 %v1697_v8  ;;  %503 = vmatmul.bf16.vlgmr.msra.gmra.mxu0 %v283_v27  ;;  %v1766_v45 = vld [vmem:[#allocation5 + $0x258] sm:$0x30]  ;;  %v191_v47 = vor.u32 %v190_v33, %v187_v25  ;;  %v2191_v48 = vld [vmem:[#allocation5 + $0x34] sm:$0xf0]  ;;  %v1888_v49 = vld [vmem:[#allocation5 + $0xb0] sm:$0xf]  ;;  %v1897_v54 = vor.u32 %v2209_v16, %v1896_v30 }
  0x41   :  { %522 = vmatmul.bf16.vlgmr.msra.gmra.mxu1 %v2584_v28  ;;  %560 = vmatmul.bf16.vlgmr.msra.gmra.mxu3 %v283_v27  ;;  %v2207_v50 = vld [vmem:[#allocation5 + $0xb4] sm:$0xf0]  ;;  %v1769_v51 = vor.u32 %v2258_v35, %v1766_v45  ;;  %v215_v55 = vor.u32 %v214_v39, %v196_v37  ;;  %v220_v58 = vrot.slane %v218_v34, 5  ;;  %v1936_v61 = vld [vmem:[#allocation5 + $0x110] sm:$0xf]  ;;  %v1825_v9 = vor.u32 %v2191_v48, %v1824_v44 }
  0x42   :  { %841 = vmatpush.bf16.msrb.mxu1 %v1841_v11  ;;  %v2219_v63 = vld [vmem:[#allocation5 + $0x114] sm:$0xf0]  ;;  %v192_v0 = vrot.slane %v191_v47, 4  ;;  %v2256_v3 = vld [vmem:[#allocation5 + $0x244] sm:$0xf]  ;;  %v1889_v13 = vor.u32 %v2207_v50, %v1888_v49  ;;  %vm957_vm5 = vcmask 1042432  }
  0x43   :  { %860 = vmatpush.bf16.msrb.mxu3 %v1905_v22  ;;  %v493_v1 = vsel %vm488_vm0, %v1769_v51, 0  ;;  %v1937_v2 = vor.u32 %v2219_v63, %v1936_v61  ;;  %v1758_v4 = vld [vmem:[#allocation5 + $0x248] sm:$0xf0]  ;;  %v216_v6 = vrot.slane %v215_v55, 4  ;;  %v2254_v10 = vld [vmem:[#allocation5 + $0x234] sm:$0xf] }
  0x44   :  { %578 = vmatpush.bf16.msrb.mxu2 %v1689_v18  ;;  %595 = vmatpush.bf16.msrb.mxu0 %v493_v1  ;;  %v1761_v7 = vor.u32 %v2256_v3, %v1758_v4  ;;  %v197_v8 = vsel %vm2530_vm3, %v192_v0, %v196_v37  ;;  %v1816_v15 = vld [vmem:[#allocation5 + $0x20] sm:$0xf]  ;;  %v2189_v17 = vld [vmem:[#allocation5 + $0x24] sm:$0xf0]  ;;  %v1750_v18 = vld [vmem:[#allocation5 + $0x238] sm:$0xf0] }
  0x45   :  { %v221_v12 = vsel %vm2530_vm3, %v216_v6, %v220_v58  ;;  %v277_v11 = vunpack.c.l.b16 %v197_v8  ;;  %v1880_v19 = vld [vmem:[#allocation5 + $0xa0] sm:$0xf]  ;;  %v2205_v20 = vld [vmem:[#allocation5 + $0xa4] sm:$0xf0]  ;;  %v278_v23 = vunpack.c.h.b16 %v197_v8  ;;  %v1808_v25 = vld [vmem:[#allocation5 + $0x10] sm:$0xf]  ;;  %v1753_v26 = vor.u32 %v2254_v10, %v1750_v18 }
  0x46   :  { %842 = vmatpush.bf16.msrb.mxu1 %v1833_v46  ;;  %v280_v22 = vunpack.c.l.b16 %v221_v12  ;;  %v281_v24 = vunpack.c.h.b16 %v221_v12  ;;  %v1817_v27 = vor.u32 %v2189_v17, %v1816_v15  ;;  %v2198_v29 = vld [vmem:[#allocation5 + $0x74] sm:$0xf]  ;;  %v1858_v30 = vld [vmem:[#allocation5 + $0x78] sm:$0xf0]  ;;  %v1928_v60 = vld [vmem:[#allocation5 + $0x100] sm:$0xf]  ;;  %v1881_v31 = vor.u32 %v2205_v20, %v1880_v19 }
  0x47   :  { %861 = vmatpush.bf16.msrb.mxu3 %v1897_v54  ;;  %v2187_v32 = vld [vmem:[#allocation5 + $0x14] sm:$0xf0]  ;;  %v1872_v16 = vld [vmem:[#allocation5 + $0x90] sm:$0xf]  ;;  %v1861_v33 = vor.u32 %v2198_v29, %v1858_v30  ;;  %v2217_v34 = vld [vmem:[#allocation5 + $0x104] sm:$0xf0] }
  0x48   :  { %882 = vmatpush.bf16.msra.mxu2 %v834_v36  ;;  %596 = vmatpush.bf16.msrb.mxu0 %v1761_v7  ;;  %v2203_v35 = vld [vmem:[#allocation5 + $0x94] sm:$0xf0]  ;;  %v1929_v36 = vor.u32 %v2217_v34, %v1928_v60  ;;  %v2196_v37 = vld [vmem:[#allocation5 + $0x64] sm:$0xf]  ;;  %v1850_v39 = vld [vmem:[#allocation5 + $0x68] sm:$0xf0]  ;;  %v286_v44 = vpack.c.b16 %v280_v22, %v277_v11  ;;  %v2596_v45 = vpack.c.b16 %v281_v24, %v278_v23 }
  0x49   :  { %v1809_v46 = vor.u32 %v2187_v32, %v1808_v25  ;;  %v1800_v47 = vld [vmem:[#allocation5] sm:$0xf]  ;;  %v2185_v48 = vld [vmem:[#allocation5 + $0x4] sm:$0xf0]  ;;  %v1873_v49 = vor.u32 %v2203_v35, %v1872_v16  ;;  %v2214_v54 = vld [vmem:[#allocation5 + $0xf4] sm:$0xf]  ;;  %v1853_v55 = vor.u32 %v2196_v37, %v1850_v39 }
  0x4a   :  { %843 = vmatpush.bf16.msrb.mxu1 %v1825_v9  ;;  %v1864_v50 = vld [vmem:[#allocation5 + $0x80] sm:$0xf]  ;;  %v2201_v51 = vld [vmem:[#allocation5 + $0x84] sm:$0xf0]  ;;  %v1922_v58 = vld [vmem:[#allocation5 + $0xf8] sm:$0xf0] }
  0x4b   :  { %862 = vmatpush.bf16.msrb.mxu3 %v1889_v13  ;;  %v2016_v61 = vld [vmem:[#allocation5 + $0x2d0] sm:$0xf]  ;;  %v2275_v63 = vld [vmem:[#allocation5 + $0x2d4] sm:$0xf0]  ;;  %v2194_v0 = vld [vmem:[#allocation5 + $0x54] sm:$0xf]  ;;  %v1865_v3 = vor.u32 %v2201_v51, %v1864_v50  ;;  %v1925_v4 = vor.u32 %v2214_v54, %v1922_v58 }
  0x4c   :  { %883 = vmatpush.bf16.msra.mxu2 %v1937_v2  ;;  %597 = vmatpush.bf16.msrb.mxu0 %v1753_v26  ;;  %v2017_v1 = vor.u32 %v2275_v63, %v2016_v61  ;;  %v1801_v2 = vor.u32 %v2185_v48, %v1800_v47  ;;  %v2008_v6 = vld [vmem:[#allocation5 + $0x2c0] sm:$0xf]  ;;  %v2273_v7 = vld [vmem:[#allocation5 + $0x2c4] sm:$0xf0]  ;;  %v2212_v8 = vld [vmem:[#allocation5 + $0xe4] sm:$0xf] }
  0x4d   :  { %v1914_v9 = vld [vmem:[#allocation5 + $0xe8] sm:$0xf0]  ;;  %v2192_v12 = vld [vmem:[#allocation5 + $0x44] sm:$0xf]  ;;  %v2009_v13 = vor.u32 %v2273_v7, %v2008_v6  ;;  %v2000_v19 = vld [vmem:[#allocation5 + $0x2b0] sm:$0xf] }
  0x4e   :  { %579 = vmatmul.bf16.vlgmr.msrb.gmra.mxu2 %v2584_v28  ;;  %844 = vmatpush.bf16.msrb.mxu1 %v1817_v27  ;;  %v1842_v28 = vld [vmem:[#allocation5 + $0x58] sm:$0xf0]  ;;  %v1834_v15 = vld [vmem:[#allocation5 + $0x48] sm:$0xf0]  ;;  %v2220_v17 = vld [vmem:[#allocation5 + $0x124] sm:$0xf]  ;;  %v1917_v22 = vor.u32 %v2212_v8, %v1914_v9 }
  0x4f   :  { %863 = vmatpush.bf16.msrb.mxu3 %v1881_v31  ;;  %v1845_v10 = vor.u32 %v2194_v0, %v1842_v28  ;;  %v1946_v18 = vld [vmem:[#allocation5 + $0x128] sm:$0x30]  ;;  %v2271_v20 = vld [vmem:[#allocation5 + $0x2b4] sm:$0xf0]  ;;  %v2210_v23 = vld [vmem:[#allocation5 + $0xd4] sm:$0xf]  ;;  %v1837_v27 = vor.u32 %v2192_v12, %v1834_v15 }
  0x50   :  { %896 = vmatpush.bf16.msra.mxu0 %v1861_v33  ;;  %884 = vmatpush.bf16.msra.mxu2 %v1929_v36  ;;  %v1949_v11 = vor.u32 %v2220_v17, %v1946_v18  ;;  %v1906_v24 = vld [vmem:[#allocation5 + $0xd8] sm:$0xf0]  ;;  %v2190_v25 = vld [vmem:[#allocation5 + $0x34] sm:$0xf]  ;;  %v1776_v26 = vld [vmem:[#allocation2] sm:$0xf]  ;;  %v2001_v30 = vor.u32 %v2271_v20, %v2000_v19 }
  0x51   :  { %508 = vmatmul.bf16.gmra.mxu0 %v286_v44  ;;  %527 = vmatmul.bf16.gmra.mxu1 %v2596_v45  ;;  %v2218_v60 = vld [vmem:[#allocation5 + $0x114] sm:$0xf]  ;;  %v1938_v31 = vld [vmem:[#allocation5 + $0x118] sm:$0xf0]  ;;  %v1992_v33 = vld [vmem:[#allocation5 + $0x2a0] sm:$0xf]  ;;  %v1909_v39 = vor.u32 %v2210_v23, %v1906_v24 }
  0x52   :  { %565 = vmatmul.bf16.gmra.mxu3 %v286_v44  ;;  %845 = vmatpush.bf16.msrb.mxu1 %v1809_v46  ;;  %v837_v29 = vsel %vm488_vm0, %v1949_v11, 0  ;;  %v1826_v32 = vld [vmem:[#allocation5 + $0x38] sm:$0xf0]  ;;  %v1941_v16 = vor.u32 %v2218_v60, %v1938_v31  ;;  %v2269_v34 = vld [vmem:[#allocation5 + $0x2a4] sm:$0xf0]  ;;  %v962_v0 = vrot.slane %v2546_v53, 5 }
  0x53   :  { %864 = vmatpush.bf16.msrb.mxu3 %v1873_v49  ;;  %v2179_v35 = vld [vmem:[#allocation2 + $0x8] sm:$0xf0]  ;;  %v2178_v36 = vld [vmem:[#allocation2 + $0x4] sm:$0xf]  ;;  %v1778_v37 = vld [vmem:[#allocation2 + $0xc] sm:$0xf0]  ;;  %v1829_v47 = vor.u32 %v2190_v25, %v1826_v32  ;;  %v1993_v50 = vor.u32 %v2269_v34, %v1992_v33 }
  0x54   :  { %897 = vmatpush.bf16.msra.mxu0 %v1853_v55  ;;  %1249 = vmatpush.bf16.msrb.mxu2 %v2017_v1  ;;  %v2208_v44 = vld [vmem:[#allocation5 + $0xc4] sm:$0xf]  ;;  %v1898_v46 = vld [vmem:[#allocation5 + $0xc8] sm:$0xf0]  ;;  %v2601_v54 = vor.u32 %v2179_v35, %v1776_v26  ;;  %v1984_v58 = vld [vmem:[#allocation5 + $0x290] sm:$0xf]  ;;  %v2604_v63 = vor.u32 %v2178_v36, %v1778_v37 }
  0x55   :  { %v2188_v48 = vld [vmem:[#allocation5 + $0x24] sm:$0xf]  ;;  %v1818_v49 = vld [vmem:[#allocation5 + $0x28] sm:$0xf0]  ;;  %v2267_v61 = vld [vmem:[#allocation5 + $0x294] sm:$0xf0]  ;;  %v1901_v28 = vor.u32 %v2208_v44, %v1898_v46 }
  0x56   :  { %846 = vmatpush.bf16.msrb.mxu1 %v1801_v2  ;;  %v2216_v51 = vld [vmem:[#allocation5 + $0x104] sm:$0xf]  ;;  %v1930_v55 = vld [vmem:[#allocation5 + $0x108] sm:$0xf0]  ;;  %v2206_v2 = vld [vmem:[#allocation5 + $0xb4] sm:$0xf]  ;;  %v1985_v7 = vor.u32 %v2267_v61, %v1984_v58 }
  0x57   :  { %865 = vmatpush.bf16.msrb.mxu3 %v1865_v3  ;;  %v1933_v1 = vor.u32 %v2216_v51, %v1930_v55  ;;  %v1890_v3 = vld [vmem:[#allocation5 + $0xb8] sm:$0xf0]  ;;  %v2186_v6 = vld [vmem:[#allocation5 + $0x14] sm:$0xf]  ;;  %v1976_v8 = vld [vmem:[#allocation5 + $0x280] sm:$0xf] }
  0x58   :  { %898 = vmatpush.bf16.msra.mxu0 %v1845_v10  ;;  %1250 = vmatpush.bf16.msrb.mxu2 %v2009_v13  ;;  %v2265_v9 = vld [vmem:[#allocation5 + $0x284] sm:$0xf0]  ;;  %v969_v53 = vrot.slane %v2554_v62, 5  ;;  %v1893_v10 = vor.u32 %v2206_v2, %v1890_v3  ;;  %v2204_v12 = vld [vmem:[#allocation5 + $0xa4] sm:$0xf]  ;;  %vm958_vm6 = vcmask 1046532  }
  0x59   :  { %v1882_v13 = vld [vmem:[#allocation5 + $0xa8] sm:$0xf0]  ;;  %v2184_v17 = vld [vmem:[#allocation5 + $0x4] sm:$0xf]  ;;  %v1968_v11 = vld [vmem:[#allocation5 + $0x270] sm:$0xf] }
  0x5a   :  { %915 = vmatpush.bf16.msra.mxu1 %v1925_v4  ;;  %v1821_v4 = vor.u32 %v2188_v48, %v1818_v49  ;;  %v1802_v18 = vld [vmem:[#allocation5 + $0x8] sm:$0xf0]  ;;  %v2263_v19 = vld [vmem:[#allocation5 + $0x274] sm:$0xf0]  ;;  %vm2612_vm7 = vmor %vm957_vm5, %vm958_vm6  ;;  %v1954_v62 = vrot.slane %v2526_v59, 9  ;;  %vm1462_vm8 = vcmask 1041409  }
  0x5b   :  { %939 = vmatpush.bf16.msra.mxu3 %v837_v29  ;;  %v2080_v23 = vld [vmem:[#allocation5 + $0x350] sm:$0xf]  ;;  %v2291_v24 = vld [vmem:[#allocation5 + $0x354] sm:$0xf0]  ;;  %v1784_v25 = vld [vmem:[#allocation2 + $0x8] sm:$0xf]  ;;  %v1805_v32 = vor.u32 %v2184_v17, %v1802_v18  ;;  %v1969_v59 = vor.u32 %v2263_v19, %v1968_v11 }
  0x5c   :  { %899 = vmatpush.bf16.msra.mxu0 %v1837_v27  ;;  %1251 = vmatpush.bf16.msrb.mxu2 %v2001_v30  ;;  %v2180_v26 = vld [vmem:[#allocation2 + $0x10] sm:$0xf0]  ;;  %v1885_v27 = vor.u32 %v2204_v12, %v1882_v13  ;;  %v2619_v29 = vsel %vm2612_vm7, %v1954_v62, %v962_v0  ;;  %v2202_v60 = vld [vmem:[#allocation5 + $0x94] sm:$0xf]  ;;  %v1874_v31 = vld [vmem:[#allocation5 + $0x98] sm:$0xf0]  ;;  %v2081_v34 = vor.u32 %v2291_v24, %v2080_v23 }
  0x5d   :  { %v1960_v35 = vld [vmem:[#allocation5 + $0x260] sm:$0xf]  ;;  %v2261_v36 = vld [vmem:[#allocation5 + $0x264] sm:$0xf0]  ;;  %v2627_v37 = vor.u32 %v2180_v26, %v1784_v25  ;;  %v1790_v48 = vld [vmem:[#allocation2 + $0x30] sm:$0xf0]  ;;  %v1877_v49 = vor.u32 %v2202_v60, %v1874_v31 }
  0x5e   :  { %916 = vmatpush.bf16.msra.mxu1 %v1917_v22  ;;  %584 = vmatmul.bf16.gmra.mxu2 %v2596_v45  ;;  %v1810_v45 = vld [vmem:[#allocation5 + $0x18] sm:$0xf0]  ;;  %v968_v22 = vrot.slane %v962_v0, 4  ;;  %v2182_v44 = vld [vmem:[#allocation2 + $0x2c] sm:$0xf0]  ;;  %v1961_v61 = vor.u32 %v2261_v36, %v1960_v35 }
  0x5f   :  { %940 = vmatpush.bf16.msra.mxu3 %v1941_v16  ;;  %v1813_v15 = vor.u32 %v2186_v6, %v1810_v45  ;;  %v1027_v16 = vunpack.c.l.b16 %v2619_v29  ;;  %v2181_v46 = vld [vmem:[#allocation2 + $0x28] sm:$0xf]  ;;  %v2289_v51 = vld [vmem:[#allocation5 + $0x344] sm:$0xf0]  ;;  %v2200_v55 = vld [vmem:[#allocation5 + $0x84] sm:$0xf] }
  0x60   :  { %900 = vmatpush.bf16.msra.mxu0 %v1829_v47  ;;  %1252 = vmatpush.bf16.msrb.mxu2 %v1993_v50  ;;  %v2623_v30 = vsel %vm2612_vm7, %v968_v22, %v969_v53  ;;  %v2072_v50 = vld [vmem:[#allocation5 + $0x340] sm:$0xf]  ;;  %v1866_v58 = vld [vmem:[#allocation5 + $0x88] sm:$0xf0]  ;;  %v2274_v2 = vld [vmem:[#allocation5 + $0x2d4] sm:$0xf]  ;;  %v2635_v3 = vor.u32 %v2181_v46, %v1790_v48 }
  0x61   :  { %1772 = vmatmul.msk.bf16.vlgmr.msrb.gmra.mxu0 %vm481_vm4, %v2540_v38  ;;  %847 = vmatmul.bf16.vlgmr.msrb.gmra.mxu1 %v2601_v54  ;;  %v1977_v38 = vor.u32 %v2265_v9, %v1976_v8  ;;  %v1030_v33 = vunpack.c.l.b16 %v2623_v30  ;;  %v2018_v6 = vld [vmem:[#allocation5 + $0x2d8] sm:$0xf0]  ;;  %v2064_v45 = vld [vmem:[#allocation5 + $0x330] sm:$0xf]  ;;  %v2287_v8 = vld [vmem:[#allocation5 + $0x334] sm:$0xf0] }
  0x62   :  { %917 = vmatpush.bf16.msra.mxu1 %v1909_v39  ;;  %866 = vmatmul.bf16.vlgmr.msrb.gmra.mxu3 %v2604_v63  ;;  %v1788_v39 = vld [vmem:[#allocation2 + $0x24] sm:$0xf]  ;;  %v2021_v53 = vor.u32 %v2274_v2, %v2018_v6  ;;  %v2074_v12 = vld [vmem:[#allocation5 + $0x348] sm:$0xf0]  ;;  %v2272_v13 = vld [vmem:[#allocation5 + $0x2c4] sm:$0xf]  ;;  %v2065_v17 = vor.u32 %v2287_v8, %v2064_v45 }
  0x63   :  { %941 = vmatpush.bf16.msra.mxu3 %v1933_v1  ;;  %v2629_v47 = vpack.c.b16 %v1030_v33, %v1027_v16  ;;  %v2631_v0 = vor.u32 %v2182_v44, %v1788_v39  ;;  %v2082_v1 = vld [vmem:[#allocation5 + $0x358] sm:$0xf0]  ;;  %v2010_v18 = vld [vmem:[#allocation5 + $0x2c8] sm:$0xf0]  ;;  %v2285_v11 = vld [vmem:[#allocation5 + $0x324] sm:$0xf0] }
  0x64   :  { %901 = vmatpush.bf16.msra.mxu0 %v1821_v4  ;;  %1253 = vmatpush.bf16.msrb.mxu2 %v1985_v7  ;;  %v2073_v4 = vor.u32 %v2289_v51, %v2072_v50  ;;  %v1869_v7 = vor.u32 %v2200_v55, %v1866_v58  ;;  %v2286_v62 = vld [vmem:[#allocation5 + $0x334] sm:$0xf]  ;;  %v2066_v22 = vld [vmem:[#allocation5 + $0x338] sm:$0xf0]  ;;  %v2104_v23 = vld [vmem:[#allocation5 + $0x380] sm:$0xf] }
  0x65   :  { %v2297_v24 = vld [vmem:[#allocation5 + $0x384] sm:$0x30]  ;;  %v1796_v25 = vld [vmem:[#allocation2 + $0x2c] sm:$0xf]  ;;  %v2270_v26 = vld [vmem:[#allocation5 + $0x2b4] sm:$0xf]  ;;  %v2069_v33 = vor.u32 %v2286_v62, %v2066_v22 }
  0x66   :  { %918 = vmatpush.bf16.msra.mxu1 %v1901_v28  ;;  %v2290_v28 = vld [vmem:[#allocation5 + $0x354] sm:$0xf]  ;;  %v2105_v60 = vor.u32 %v2297_v24, %v2104_v23  ;;  %v2183_v31 = vld [vmem:[#allocation2 + $0x34] sm:$0xf0]  ;;  %v2283_v16 = vld [vmem:[#allocation5 + $0x314] sm:$0xf0] }
  0x67   :  { %v2085_v9 = vor.u32 %v2290_v28, %v2082_v1  ;;  %1306 = vmatpush.bf16.msrb.mxu3 %v2021_v53  ;;  %v2096_v35 = vld [vmem:[#allocation5 + $0x370] sm:$0xf]  ;;  %v2295_v36 = vld [vmem:[#allocation5 + $0x374] sm:$0xf0]  ;;  %v1956_v39 = vrot.slane %v2566_v41, 9  ;;  %v976_v50 = vrot.slane %v2577_v14, 5 }
  0x68   :  { %902 = vmatpush.bf16.msra.mxu0 %v1813_v15  ;;  %1254 = vmatpush.bf16.msrb.mxu2 %v1977_v38  ;;  %v966_v15 = vrot.slane %v2517_v42, 5  ;;  %v2056_v38 = vld [vmem:[#allocation5 + $0x320] sm:$0xf]  ;;  %v2284_v46 = vld [vmem:[#allocation5 + $0x324] sm:$0xf]  ;;  %v983_v51 = vrot.slane %v2579_v21, 5 }
  0x69   :  { %v2058_v48 = vld [vmem:[#allocation5 + $0x328] sm:$0xf0]  ;;  %v2268_v55 = vld [vmem:[#allocation5 + $0x2a4] sm:$0xf]  ;;  %v2650_v1 = vsel %vm2612_vm7, %v1956_v39, %v976_v50  ;;  %v982_v41 = vrot.slane %v976_v50, 4  ;;  %v1955_v2 = vrot.slane %v2515_v40, 9 }
  0x6a   :  { %919 = vmatpush.bf16.msra.mxu1 %v1893_v10  ;;  %v2288_v10 = vld [vmem:[#allocation5 + $0x344] sm:$0xf]  ;;  %v1994_v58 = vld [vmem:[#allocation5 + $0x2a8] sm:$0xf0]  ;;  %v2281_v6 = vld [vmem:[#allocation5 + $0x304] sm:$0xf0]  ;;  %v1033_v14 = vunpack.c.l.b16 %v2650_v1 }
  0x6b   :  { %v2077_v19 = vor.u32 %v2288_v10, %v2074_v12  ;;  %v971_v21 = vrot.slane %v966_v15, 4  ;;  %v972_v45 = vrot.slane %v2519_v43, 5  ;;  %v1997_v8 = vor.u32 %v2268_v55, %v1994_v58  ;;  %v2282_v53 = vld [vmem:[#allocation5 + $0x314] sm:$0xf]  ;;  %v2050_v10 = vld [vmem:[#allocation5 + $0x318] sm:$0xf0] }
  0x6c   :  { %903 = vmatpush.bf16.msra.mxu0 %v1805_v32  ;;  %1255 = vmatpush.bf16.msrb.mxu2 %v1969_v59  ;;  %v2057_v32 = vor.u32 %v2285_v11, %v2056_v38  ;;  %v2048_v59 = vld [vmem:[#allocation5 + $0x310] sm:$0xf]  ;;  %v2266_v12 = vld [vmem:[#allocation5 + $0x294] sm:$0xf]  ;;  %v2293_v43 = vld [vmem:[#allocation5 + $0x364] sm:$0xf0]  ;;  %v1028_v38 = vunpack.c.h.b16 %v2619_v29  ;;  %v1031_v11 = vunpack.c.h.b16 %v2623_v30  ;;  %v2053_v22 = vor.u32 %v2282_v53, %v2050_v10 }
  0x6d   :  { %v2049_v28 = vor.u32 %v2283_v16, %v2048_v59  ;;  %v2279_v62 = vld [vmem:[#allocation5 + $0x2f4] sm:$0xf0]  ;;  %v967_v24 = vsel %vm2612_vm7, %v1955_v2, %v966_v15  ;;  %v973_v29 = vsel %vm2612_vm7, %v971_v21, %v972_v45  ;;  %v1978_v15 = vld [vmem:[#allocation5 + $0x288] sm:$0xf0]  ;;  %v2024_v59 = vld [vmem:[#allocation5 + $0x2e0] sm:$0xf]  ;;  %v1034_v2 = vunpack.c.h.b16 %v2650_v1 }
  0x6e   :  { %920 = vmatpush.bf16.msra.mxu1 %v1885_v27  ;;  %1950 = vmatmul.msk.bf16.vlgmr.msra.gmra.mxu2 %vm481_vm4, %v2627_v37  ;;  %v2002_v27 = vld [vmem:[#allocation5 + $0x2b8] sm:$0xf0]  ;;  %v1029_v30 = vunpack.c.l.b16 %v967_v24  ;;  %v2277_v16 = vld [vmem:[#allocation5 + $0x2e4] sm:$0xf0]  ;;  %v2260_v50 = vld [vmem:[#allocation5 + $0x264] sm:$0xf] }
  0x6f   :  { %v2005_v44 = vor.u32 %v2270_v26, %v2002_v27  ;;  %v2672_v26 = vpack.c.b16 %v1031_v11, %v1028_v38  ;;  %v2280_v27 = vld [vmem:[#allocation5 + $0x304] sm:$0xf]  ;;  %v1970_v39 = vld [vmem:[#allocation5 + $0x278] sm:$0xf0]  ;;  %v2294_v21 = vld [vmem:[#allocation5 + $0x374] sm:$0xf] }
  0x70   :  { %1268 = vmatpush.bf16.msrb.mxu0 %v2081_v34  ;;  %1256 = vmatpush.bf16.msrb.mxu2 %v1961_v61  ;;  %v1244_v34 = vsel %vm488_vm0, %v2105_v60, 0  ;;  %v2646_v61 = vor.u32 %v2183_v31, %v1796_v25  ;;  %v2042_v60 = vld [vmem:[#allocation5 + $0x308] sm:$0xf0]  ;;  %v1032_v31 = vunpack.c.l.b16 %v973_v29  ;;  %v2098_v45 = vld [vmem:[#allocation5 + $0x378] sm:$0xf0]  ;;  %v986_v53 = vrot.slane %v2550_v57, 5 }
  0x71   :  { %1773 = vmatmul.msk.bf16.gmra.mxu0 %vm481_vm4, %v2573_v5  ;;  %852 = vmatmul.bf16.gmra.mxu1 %v2631_v0  ;;  %v2013_v5 = vor.u32 %v2272_v13, %v2010_v18  ;;  %v2088_v18 = vld [vmem:[#allocation5 + $0x360] sm:$0xf]  ;;  %v2101_v1 = vor.u32 %v2294_v21, %v2098_v45 }
  0x72   :  { %921 = vmatpush.bf16.msra.mxu1 %v1877_v49  ;;  %871 = vmatmul.bf16.gmra.mxu3 %v2635_v3  ;;  %v2097_v49 = vor.u32 %v2295_v36, %v2096_v35  ;;  %v2089_v23 = vor.u32 %v2293_v43, %v2088_v18  ;;  %v2034_v35 = vld [vmem:[#allocation5 + $0x2f8] sm:$0xf0]  ;;  %v2262_v36 = vld [vmem:[#allocation5 + $0x274] sm:$0xf] }
  0x73   :  { %1307 = vmatpush.bf16.msrb.mxu3 %v2013_v5 }
  0x74   :  { %1269 = vmatpush.bf16.msrb.mxu0 %v2073_v4  ;;  %1325 = vmatpush.bf16.msra.mxu2 %v2085_v9  ;;  %v2040_v4 = vld [vmem:[#allocation5 + $0x300] sm:$0xf]  ;;  %v2659_v9 = vsel %vm2612_vm7, %v982_v41, %v983_v51  ;;  %v1962_v51 = vld [vmem:[#allocation5 + $0x268] sm:$0xf0] }
  0x75   :  { %v1036_v40 = vunpack.c.l.b16 %v2659_v9  ;;  %v2041_v13 = vor.u32 %v2281_v6, %v2040_v4  ;;  %v1965_v58 = vor.u32 %v2260_v50, %v1962_v51  ;;  %v2106_v41 = vld [vmem:[#allocation5 + $0x388] sm:$0x30]  ;;  %v1037_v4 = vunpack.c.h.b16 %v2659_v9 }
  0x76   :  { %922 = vmatpush.bf16.msra.mxu1 %v1869_v7  ;;  %v2061_v7 = vor.u32 %v2284_v46, %v2058_v48  ;;  %v1973_v46 = vor.u32 %v2262_v36, %v1970_v39  ;;  %v2276_v48 = vld [vmem:[#allocation5 + $0x2e4] sm:$0xf]  ;;  %v2090_v9 = vld [vmem:[#allocation5 + $0x368] sm:$0xf0] }
  0x77   :  { %1308 = vmatpush.bf16.msrb.mxu3 %v2005_v44  ;;  %v2666_v5 = vpack.c.b16 %v1036_v40, %v1033_v14  ;;  %v2025_v44 = vor.u32 %v2277_v16, %v2024_v59 }
  0x78   :  { %1270 = vmatpush.bf16.msrb.mxu0 %v2065_v17  ;;  %1326 = vmatpush.bf16.msra.mxu2 %v2077_v19  ;;  %v1986_v17 = vld [vmem:[#allocation5 + $0x298] sm:$0xf0]  ;;  %v2032_v19 = vld [vmem:[#allocation5 + $0x2f0] sm:$0xf] }
  0x79   :  { %v1989_v25 = vor.u32 %v2266_v12, %v1986_v17  ;;  %v2033_v42 = vor.u32 %v2279_v62, %v2032_v19 }
  0x7a   :  { %1292 = vmatpush.bf16.msrb.mxu1 %v1244_v34  ;;  %v2680_v34 = vpack.c.b16 %v1032_v31, %v1029_v30 }
  0x7b   :  { %1309 = vmatpush.bf16.msrb.mxu3 %v1997_v8  ;;  %v2292_v8 = vld [vmem:[#allocation5 + $0x364] sm:$0xf] }
  0x7c   :  { %1271 = vmatpush.bf16.msrb.mxu0 %v2057_v32  ;;  %1327 = vmatpush.bf16.msra.mxu2 %v2069_v33  ;;  %v2264_v32 = vld [vmem:[#allocation5 + $0x284] sm:$0xf]  ;;  %v2045_v33 = vor.u32 %v2280_v27, %v2042_v60  ;;  %v2093_v40 = vor.u32 %v2292_v8, %v2090_v9 }
  0x7e   :  { %1293 = vmatpush.bf16.msrb.mxu1 %v2097_v49  ;;  %1951 = vmatmul.msk.bf16.gmra.mxu2 %vm481_vm4, %v2646_v61  ;;  %v2026_v49 = vld [vmem:[#allocation5 + $0x2e8] sm:$0xf0] }
  0x7f   :  { %1310 = vmatpush.bf16.msrb.mxu3 %v1989_v25  ;;  %v2029_v55 = vor.u32 %v2276_v48, %v2026_v49 }
  0x80   :  { %1272 = vmatpush.bf16.msrb.mxu0 %v2049_v28  ;;  %1328 = vmatpush.bf16.msra.mxu2 %v2061_v7  ;;  %v2296_v28 = vld [vmem:[#allocation5 + $0x384] sm:$0xf]  ;;  %v1043_v7 = vpack.c.b16 %v1037_v4, %v1034_v2 }
  0x81   :  { %904 = vmatmul.bf16.vlgmr.msra.gmra.mxu0 %v2601_v54  ;;  %923 = vmatmul.bf16.vlgmr.msra.gmra.mxu1 %v2604_v63  ;;  %v1981_v54 = vor.u32 %v2264_v32, %v1978_v15  ;;  %v2278_v63 = vld [vmem:[#allocation5 + $0x2f4] sm:$0xf]  ;;  %v2109_v6 = vor.u32 %v2296_v28, %v2106_v41 }
  0x82   :  { %1952 = vmatmul.msk.bf16.vlgmr.msra.gmra.mxu3 %vm481_vm4, %v2627_v37  ;;  %1294 = vmatpush.bf16.msrb.mxu1 %v2089_v23  ;;  %v2037_v37 = vor.u32 %v2278_v63, %v2034_v35 }
  0x83   :  { %1311 = vmatpush.bf16.msrb.mxu3 %v1981_v54  ;;  %v1247_v14 = vsel %vm488_vm0, %v2109_v6, 0 }
  0x84   :  { %1273 = vmatpush.bf16.msrb.mxu0 %v2041_v13  ;;  %1329 = vmatpush.bf16.msra.mxu2 %v2053_v22 }
  0x87   :  { %1312 = vmatpush.bf16.msrb.mxu3 %v1973_v46 }
  0x88   :  { %1274 = vmatpush.bf16.msrb.mxu0 %v2033_v42  ;;  %1330 = vmatpush.bf16.msra.mxu2 %v2045_v33 }
  0x8b   :  { %1313 = vmatpush.bf16.msrb.mxu3 %v1965_v58 }
  0x8c   :  { %1275 = vmatpush.bf16.msrb.mxu0 %v2025_v44  ;;  %1331 = vmatpush.bf16.msra.mxu2 %v2037_v37 }
  0x8e   :  { %1257 = vmatmul.bf16.vlgmr.msrb.gmra.mxu2 %v2629_v47 }
  0x90   :  { %1332 = vmatpush.bf16.msra.mxu2 %v2029_v55  ;;  %1349 = vmatpush.bf16.msra.mxu0 %v1247_v14 }
  0x91   :  { %909 = vmatmul.bf16.gmra.mxu0 %v2631_v0  ;;  %928 = vmatmul.bf16.gmra.mxu1 %v2635_v3  ;;  %v980_v0 = vrot.slane %v2548_v56, 5  ;;  %v1957_v3 = vrot.slane %v2544_v52, 9 }
  0x92   :  { %1953 = vmatmul.msk.bf16.gmra.mxu3 %vm481_vm4, %v2646_v61 }
  0x93   :  { %v985_v61 = vrot.slane %v980_v0, 4  ;;  %v981_v10 = vsel %vm2612_vm7, %v1957_v3, %v980_v0 }
  0x94   :  { %2314 = vmatpush.bf16.msrb.mxu2 %v1247_v14  ;;  %1350 = vmatpush.bf16.msra.mxu0 %v2101_v1  ;;  %v1035_v12 = vunpack.c.l.b16 %v981_v10 }
  0x95   :  { %v987_v56 = vsel %vm2612_vm7, %v985_v61, %v986_v53 }
  0x96   :  { %v1038_v13 = vunpack.c.l.b16 %v987_v56 }
  0x98   :  { %2315 = vmatpush.bf16.msrb.mxu2 %v2101_v1  ;;  %1351 = vmatpush.bf16.msra.mxu0 %v2093_v40  ;;  %v1044_v17 = vpack.c.b16 %v1038_v13, %v1035_v12 }
  0x9c   :  { %2316 = vmatpush.bf16.msrb.mxu2 %v2093_v40 }
  0x9e   :  { %1262 = vmatmul.bf16.gmra.mxu2 %v2666_v5 }
  0xa1   :  { %1276 = vmatmul.bf16.vlgmr.msrb.gmra.mxu0 %v2672_v26  ;;  %2110 = vmatmul.msk.bf16.vlgmr.msrb.gmra.mxu1 %vm481_vm4, %v2680_v34 }
  0xa2   :  { %1314 = vmatmul.bf16.vlgmr.msrb.gmra.mxu3 %v2629_v47 }
  0xae   :  { %1333 = vmatmul.bf16.vlgmr.msra.gmra.mxu2 %v2672_v26 }
  0xb1   :  { %v542_v18 = vpop.f32.mrf.mxu2  ;;  %1281 = vmatmul.bf16.gmra.mxu0 %v1043_v7  ;;  %2111 = vmatmul.msk.bf16.gmra.mxu1 %vm481_vm4, %v1044_v17 }
  0xb2   :  { %1319 = vmatmul.bf16.gmra.mxu3 %v2666_v5 }
  0xb9   :  { %v544_v52 = vpop.f32.mrf.mxu2 }
  0xbd   :  { %v504_v47 = vpop.f32.mrf.mxu0 }
  0xbe   :  { %v523_v57 = vpop.f32.mrf.mxu1  ;;  %1338 = vmatmul.bf16.gmra.mxu2 %v1043_v7 }
  0xbf   :  { %v524_v43 = vadd.f32 %v523_v57, %v504_v47 }
  0xc1   :  { %v547_v38 = vpop.f32.mrf.mxu2  ;;  %2112 = vmatmul.msk.bf16.vlgmr.msra.gmra.mxu0 %vm481_vm4, %v2680_v34  ;;  %v543_v20 = vadd.f32 %v542_v18, %v524_v43 }
  0xc4   :  { %v561_v11 = vpop.f32.mrf.mxu3 }
  0xc5   :  { %v506_v19 = vpop.f32.mrf.mxu0 }
  0xc6   :  { %v525_v62 = vpop.f32.mrf.mxu1 }
  0xc7   :  { %v526_v22 = vadd.f32 %v525_v62, %v506_v19 }
  0xc9   :  { %v549_v23 = vpop.f32.mrf.mxu2  ;;  %v545_v24 = vadd.f32 %v544_v52, %v526_v22 }
  0xcc   :  { %v563_v25 = vpop.f32.mrf.mxu3 }
  0xce   :  { %v509_v26 = vpop.f32.mrf.mxu0  ;;  %v528_v29 = vpop.f32.mrf.mxu1  ;;  %2113 = vmatmul.msk.bf16.vlgmr.msrb.gmra.mxu2 %vm481_vm4, %v1044_v17 }
  0xcf   :  { %v529_v5 = vadd.f32 %v528_v29, %v509_v26  ;;  %v2304_v26 = vld [vmem:[#allocation8 + $0x30] sm:$0xff] }
  0xd1   :  { %v580_v30 = vpop.f32.mrf.mxu2  ;;  %v548_v27 = vadd.f32 %v547_v38, %v529_v5 }
  0xd2   :  { %v581_v60 = vadd.f32 %v580_v30, %v561_v11  ;;  %v2303_v30 = vld [vmem:[#allocation8 + $0x28] sm:$0xff] }
  0xd5   :  { %v566_v31 = vpop.f32.mrf.mxu3 }
  0xd6   :  { %v511_v32 = vpop.f32.mrf.mxu0  ;;  %v530_v42 = vpop.f32.mrf.mxu1 }
  0xd7   :  { %v531_v15 = vadd.f32 %v530_v42, %v511_v32 }
  0xd9   :  { %v582_v59 = vpop.f32.mrf.mxu2  ;;  %v2708_v16 = vadd.f32 %v549_v23, %v531_v15  ;;  %v2305_v23 = vld [vmem:[#allocation8 + $0x38] sm:$0xff] }
  0xda   :  { %v583_v33 = vadd.f32 %v582_v59, %v563_v25  ;;  %1566 = vmatpush.bf16.msra.mxu1 %v2305_v23 }
  0xdd   :  { %v568_v63 = vpop.f32.mrf.mxu3 }
  0xde   :  { %v599_v34 = vpop.f32.mrf.mxu0  ;;  %v848_v54 = vpop.f32.mrf.mxu1  ;;  %1567 = vmatpush.bf16.msra.mxu1 %v2304_v26 }
  0xdf   :  { %v600_v35 = vadd.f32 %v599_v34, %v581_v60  ;;  %v849_v36 = vadd.f32 %v848_v54, %v543_v20  ;;  %v2301_v34 = vld [vmem:[#allocation8 + $0x18] sm:$0xff] }
  0xe1   :  { %v585_v39 = vpop.f32.mrf.mxu2 }
  0xe2   :  { %v586_v44 = vadd.f32 %v585_v39, %v566_v31  ;;  %1568 = vmatpush.bf16.msra.mxu1 %v2303_v30  ;;  %v2302_v31 = vld [vmem:[#allocation8 + $0x20] sm:$0xff]  ;;  %v2300_v39 = vld [vmem:[#allocation8 + $0x10] sm:$0xff] }
  0xe5   :  { %v867_v50 = vpop.f32.mrf.mxu3 }
  0xe6   :  { %v601_v37 = vpop.f32.mrf.mxu0  ;;  %v850_v46 = vpop.f32.mrf.mxu1  ;;  %v868_v4 = vadd.f32 %v867_v50, %v849_v36  ;;  %1569 = vmatpush.bf16.msra.mxu1 %v2302_v31  ;;  %v2299_v50 = vld [vmem:[#allocation8 + $0x8] sm:$0xff]  ;;  %v2310_v31 = vld [vmem:[#allocation8 + $0x60] sm:$0xff] }
  0xe7   :  { %v602_v48 = vadd.f32 %v601_v37, %v583_v33  ;;  %v851_v49 = vadd.f32 %v850_v46, %v545_v24 }
  0xe9   :  { %v587_v51 = vpop.f32.mrf.mxu2 }
  0xea   :  { %v588_v55 = vadd.f32 %v587_v51, %v568_v63  ;;  %1570 = vmatpush.bf16.msra.mxu1 %v2301_v34 }
  0xed   :  { %v869_v14 = vpop.f32.mrf.mxu3 }
  0xee   :  { %v604_v58 = vpop.f32.mrf.mxu0  ;;  %v853_v28 = vpop.f32.mrf.mxu1  ;;  %v870_v8 = vadd.f32 %v869_v14, %v851_v49  ;;  %1571 = vmatpush.bf16.msra.mxu1 %v2300_v39 }
  0xef   :  { %v605_v41 = vadd.f32 %v604_v58, %v586_v44  ;;  %v2710_v2 = vadd.f32 %v853_v28, %v548_v27  ;;  %v2298_v28 = vld [vmem:[#allocation8] sm:$0xff] }
  0xf1   :  { %v886_v6 = vpop.f32.mrf.mxu2 }
  0xf2   :  { %v887_v7 = vadd.f32 %v886_v6, %v868_v4  ;;  %1572 = vmatpush.bf16.msra.mxu1 %v2299_v50 }
  0xf5   :  { %v872_v0 = vpop.f32.mrf.mxu3 }
  0xf6   :  { %v606_v21 = vpop.f32.mrf.mxu0  ;;  %v2712_v45 = vpop.f32.mrf.mxu1  ;;  %v873_v4 = vadd.f32 %v872_v0, %v2710_v2  ;;  %1573 = vmatpush.bf16.msra.mxu1 %v2298_v28  ;;  %v2312_v2 = vld [vmem:[#allocation8 + $0x70] sm:$0xff] }
  0xf7   :  { %v2714_v1 = vadd.f32 %v606_v21, %v588_v55 }
  0xf9   :  { %v888_v9 = vpop.f32.mrf.mxu2 }
  0xfa   :  { %v889_v40 = vadd.f32 %v888_v9, %v870_v8 }
  0xfd   :  { %v874_v17 = vpop.f32.mrf.mxu3 }
  0xfe   :  { %v905_v3 = vpop.f32.mrf.mxu0  ;;  %v924_v61 = vpop.f32.mrf.mxu1 }
  0xff   :  { %v906_v53 = vadd.f32 %v905_v3, %v600_v35 }
 0x101   :  { %v2716_v10 = vadd.f32 %v924_v61, %v906_v53  ;;  %v2718_v56 = vpop.f32.mrf.mxu2 }
 0x102   :  { %v892_v3 = vadd.f32 %v2718_v56, %v873_v4  ;;  %v2311_v56 = vld [vmem:[#allocation8 + $0x68] sm:$0xff] }
 0x105   :  { %v2722_v20 = vpop.f32.mrf.mxu3 }
 0x106   :  { %v907_v12 = vpop.f32.mrf.mxu0  ;;  %v926_v13 = vpop.f32.mrf.mxu1 }
 0x107   :  { %v908_v18 = vadd.f32 %v907_v12, %v602_v48 }
 0x109   :  { %v2720_v52 = vadd.f32 %v926_v13, %v908_v18  ;;  %v893_v47 = vpop.f32.mrf.mxu2  ;;  %v2313_v13 = vld [vmem:[#allocation8 + $0x78] sm:$0xff] }
 0x10a   :  { %1579 = vmatpush.bf16.msra.mxu3 %v2313_v13 }
 0x10d   :  { %v2730_v25 = vpop.f32.mrf.mxu3 }
 0x10e   :  { %v910_v57 = vpop.f32.mrf.mxu0  ;;  %v929_v43 = vpop.f32.mrf.mxu1  ;;  %1580 = vmatpush.bf16.msra.mxu3 %v2312_v2 }
 0x10f   :  { %v911_v38 = vadd.f32 %v910_v57, %v605_v41  ;;  %v856_v41 = vadd.f32 %v2712_v45, %v2708_v16 }
 0x111   :  { %v2724_v11 = vadd.f32 %v929_v43, %v911_v38  ;;  %v1258_v19 = vpop.f32.mrf.mxu2  ;;  %v875_v14 = vadd.f32 %v874_v17, %v856_v41  ;;  %v2740_v17 = vld [vmem:[#allocation7] sm:$0x3] }
 0x112   :  { %v1401_v26 = vperm.slane %v2740_v17, 0  ;;  %1581 = vmatpush.bf16.msra.mxu3 %v2311_v56 }
 0x113   :  { %v894_v61 = vadd.f32 %v893_v47, %v875_v14 }
 0x115   :  { %v2732_v32 = vpop.f32.mrf.mxu3 }
 0x116   :  { %v2726_v62 = vpop.f32.mrf.mxu0  ;;  %v2728_v22 = vpop.f32.mrf.mxu1  ;;  %1582 = vmatpush.bf16.msra.mxu3 %v2310_v31 }
 0x119   :  { %v1260_v24 = vpop.f32.mrf.mxu2 }
 0x11d   :  { %v2734_v48 = vpop.f32.mrf.mxu3 }
 0x11e   :  { %v1277_v29 = vpop.f32.mrf.mxu0  ;;  %v1296_v5 = vpop.f32.mrf.mxu1 }
 0x11f   :  { %v1278_v60 = vadd.f32 %v1277_v29, %v1258_v19 }
 0x121   :  { %v1263_v27 = vpop.f32.mrf.mxu2  ;;  %v1297_v59 = vadd.f32 %v1296_v5, %v1278_v60 }
 0x123   :  { %v1363_v35 = vadd.f32 %v1297_v59, %v887_v7  ;;  %v946_v59 = vadd.f32 %v2730_v25, %v2720_v52  ;;  %v2307_v52 = vld [vmem:[#allocation8 + $0x48] sm:$0xff] }
 0x125   :  { %v1315_v9 = vpop.f32.mrf.mxu3 }
 0x126   :  { %v1279_v42 = vpop.f32.mrf.mxu0  ;;  %v1298_v15 = vpop.f32.mrf.mxu1 }
 0x127   :  { %v1280_v33 = vadd.f32 %v1279_v42, %v1260_v24  ;;  %v944_v42 = vadd.f32 %v2722_v20, %v2716_v10  ;;  %v2308_v10 = vld [vmem:[#allocation8 + $0x50] sm:$0xff] }
 0x129   :  { %v1299_v54 = vadd.f32 %v1298_v15, %v1280_v33  ;;  %v1265_v63 = vpop.f32.mrf.mxu2 }
 0x12b   :  { %v1365_v36 = vadd.f32 %v1299_v54, %v889_v40 }
 0x12d   :  { %v1371_v44 = vmax.f32 %v1363_v35, %v1365_v36  ;;  %v1317_v23 = vpop.f32.mrf.mxu3 }
 0x12e   :  { %v1282_v37 = vpop.f32.mrf.mxu0  ;;  %v1301_v46 = vpop.f32.mrf.mxu1 }
 0x12f   :  { %v1372_v49 = vrot.slane %v1371_v44, 4  ;;  %v1283_v58 = vadd.f32 %v1282_v37, %v1263_v27 }
 0x131   :  { %v1334_v51 = vpop.f32.mrf.mxu2  ;;  %v1373_v55 = vmax.f32 %v1371_v44, %v1372_v49  ;;  %v1302_v8 = vadd.f32 %v1301_v46, %v1283_v58  ;;  %v2309_v44 = vld [vmem:[#allocation8 + $0x58] sm:$0xff] }
 0x132   :  { %v1335_v29 = vadd.f32 %v1334_v51, %v1315_v9  ;;  %1583 = vmatpush.bf16.msra.mxu3 %v2309_v44 }
 0x133   :  { %v1374_v21 = vrot.slane %v1373_v55, 2  ;;  %v1367_v57 = vadd.f32 %v1302_v8, %v892_v3 }
 0x135   :  { %v1375_v18 = vmax.f32 %v1373_v55, %v1374_v21  ;;  %v1320_v49 = vpop.f32.mrf.mxu3 }
 0x136   :  { %v1284_v6 = vpop.f32.mrf.mxu0  ;;  %v1303_v7 = vpop.f32.mrf.mxu1  ;;  %1584 = vmatpush.bf16.msra.mxu3 %v2308_v10 }
 0x137   :  { %v1285_v40 = vadd.f32 %v1284_v6, %v1265_v63  ;;  %v1376_v0 = vrot.slane %v1375_v18, 1  ;;  %v2306_v6 = vld [vmem:[#allocation8 + $0x40] sm:$0xff] }
 0x139   :  { %v1304_v53 = vadd.f32 %v1303_v7, %v1285_v40  ;;  %v1336_v12 = vpop.f32.mrf.mxu2  ;;  %v1377_v47 = vmax.f32 %v1375_v18, %v1376_v0  ;;  %v913_v7 = vadd.f32 %v2726_v62, %v2714_v1  ;;  %v949_v18 = vadd.f32 %v2732_v32, %v2724_v11 }
 0x13a   :  { %v1337_v27 = vadd.f32 %v1336_v12, %v1317_v23  ;;  %1585 = vmatpush.bf16.msra.mxu3 %v2307_v52 }
 0x13b   :  { %v1369_v43 = vadd.f32 %v1304_v53, %v894_v61  ;;  %v1405_v33 = vadd.f32 %v1401_v26, %v1377_v47  ;;  %v932_v3 = vadd.f32 %v2728_v22, %v913_v7  ;;  %v1402_v22 = vperm.slane %v2740_v17, 1  ;;  %v2330_v17 = vld [vmem:[%s2766_s4] ss:$0 sm:$0xff] }
 0x13d   :  { %v1385_v16 = vmax.f32 %v1367_v57, %v1369_v43  ;;  %v1409_v37 = vmax.f32 %v1405_v33, 0.0  ;;  %v1322_v21 = vpop.f32.mrf.mxu3  ;;  %v951_v57 = vadd.f32 %v2734_v48, %v932_v3 }
 0x13e   :  { %v1353_v45 = vpop.f32.mrf.mxu0  ;;  %1586 = vmatpush.bf16.msra.mxu3 %v2306_v6 }
 0x13f   :  { %v1386_v38 = vrot.slane %v1385_v16, 4  ;;  %v1354_v60 = vadd.f32 %v1353_v45, %v1335_v29  ;;  %v1413_v20 = vpack.c.bf16 %v1409_v37, %v1409_v37 }
 0x141   :  { %v1387_v19 = vmax.f32 %v1385_v16, %v1386_v38  ;;  %v1339_v24 = vpop.f32.mrf.mxu2  ;;  %v1364_v35 = vadd.f32 %v1354_v60, %v944_v42  ;;  %v1457_v41 = vunpack.c.l.b16 %v1413_v20 }
 0x142   :  { %v1340_v9 = vadd.f32 %v1339_v24, %v1320_v49 }
 0x143   :  { %v1388_v5 = vrot.slane %v1387_v19, 2 }
 0x145   :  { %v1389_v30 = vmax.f32 %v1387_v19, %v1388_v5 }
 0x146   :  { %v1355_v15 = vpop.f32.mrf.mxu0 }
 0x147   :  { %v1390_v34 = vrot.slane %v1389_v30, 1  ;;  %v1356_v54 = vadd.f32 %v1355_v15, %v1337_v27 }
 0x149   :  { %v1391_v63 = vmax.f32 %v1389_v30, %v1390_v34  ;;  %v1366_v36 = vadd.f32 %v1356_v54, %v946_v59  ;;  %v1341_v39 = vpop.f32.mrf.mxu2 }
 0x14a   :  { %v1342_v53 = vadd.f32 %v1341_v39, %v1322_v21 }
 0x14b   :  { %v1407_v46 = vadd.f32 %v1401_v26, %v1391_v63  ;;  %v1378_v50 = vmax.f32 %v1364_v35, %v1366_v36 }
 0x14d   :  { %v1411_v51 = vmax.f32 %v1407_v46, 0.0  ;;  %v1379_v25 = vrot.slane %v1378_v50, 4 }
 0x14f   :  { %v1415_v55 = vpack.c.bf16 %v1411_v51, %v1411_v51  ;;  %v1380_v14 = vmax.f32 %v1378_v50, %v1379_v25 }
 0x151   :  { %v1358_v58 = vpop.f32.mrf.mxu2  ;;  %v1459_v28 = vunpack.c.l.b16 %v1415_v55  ;;  %v1381_v61 = vrot.slane %v1380_v14, 2 }
 0x152   :  { %v1359_v12 = vadd.f32 %v1358_v58, %v1340_v9 }
 0x153   :  { %v1461_v4 = vrot.slane %v1459_v28, 7  ;;  %v1382_v62 = vmax.f32 %v1380_v14, %v1381_v61 }
 0x154   :  { %v1368_v43 = vadd.f32 %v1359_v12, %v949_v18 }
 0x155   :  { %v1463_v8 = vsel %vm1462_vm8, %v1461_v4, %v1457_v41  ;;  %v1383_v45 = vrot.slane %v1382_v62, 1 }
 0x156   :  { %v1466_v40 = vpack.c.b16 %v1463_v8, %v1463_v8 }
 0x157   :  { %v1384_v19 = vmax.f32 %v1382_v62, %v1383_v45 }
 0x158   :  { %1574 = vmatmul.bf16.vlgmr.msra.gmra.mxu1 %v1466_v40 }
 0x159   :  { %v1360_v13 = vpop.f32.mrf.mxu2  ;;  %v1406_v56 = vadd.f32 %v1402_v22, %v1384_v19 }
 0x15a   :  { %v1361_v1 = vadd.f32 %v1360_v13, %v1342_v53 }
 0x15b   :  { %v1410_v29 = vmax.f32 %v1406_v56, 0.0 }
 0x15c   :  { %v1370_v16 = vadd.f32 %v1361_v1, %v951_v57 }
 0x15d   :  { %v1414_v48 = vpack.c.bf16 %v1410_v29, %v1410_v29 }
 0x15e   :  { %v1392_v2 = vmax.f32 %v1368_v43, %v1370_v16 }
 0x15f   :  { %v1458_v27 = vunpack.c.l.b16 %v1414_v48 }
 0x160   :  { %v1393_v0 = vrot.slane %v1392_v2, 4 }
 0x162   :  { %v1394_v38 = vmax.f32 %v1392_v2, %v1393_v0 }
 0x164   :  { %v1395_v23 = vrot.slane %v1394_v38, 2 }
 0x166   :  { %v1396_v24 = vmax.f32 %v1394_v38, %v1395_v23 }
 0x168   :  { %v1397_v47 = vrot.slane %v1396_v24, 1 }
 0x16a   :  { %v1398_v26 = vmax.f32 %v1396_v24, %v1397_v47 }
 0x16c   :  { %v1408_v11 = vadd.f32 %v1402_v22, %v1398_v26 }
 0x16e   :  { %v1412_v32 = vmax.f32 %v1408_v11, 0.0 }
 0x170   :  { %v1416_v5 = vpack.c.bf16 %v1412_v32, %v1412_v32 }
 0x172   :  { %v1460_v30 = vunpack.c.l.b16 %v1416_v5 }
 0x174   :  { %v1464_v60 = vrot.slane %v1460_v30, 7 }
 0x176   :  { %v1465_v31 = vsel %vm1462_vm8, %v1464_v60, %v1458_v27 }
 0x177   :  { %v1467_v42 = vpack.c.b16 %v1465_v31, %v1465_v31 }
 0x179   :  { %1587 = vmatmul.bf16.vlgmr.msra.gmra.mxu3 %v1467_v42 }
 0x1d5   :  { %v1575_v15 = vpop.f32.mrf.mxu1 }
 0x1d6   :  { %v1576_v33 = vadd.f32 %v2330_v17, %v1575_v15 }
 0x1dd   :  { %v1577_v59 = vpop.f32.mrf.mxu1 }
 0x1fc   :  { %v1588_v34 = vpop.f32.mrf.mxu3 }
 0x1fd   :  { %v1589_v54 = vadd.f32 %v1588_v34, %v1576_v33 }
 0x1ff   :  { %v1593_v63 = vrot.slane %v1589_v54, 1  ;;  %1595 = vst [vmem:[#allocation10] sm:$0x1] %v1589_v54 }
 0x201   :  { %1596 = vst [vmem:[#allocation10 + $0x1] sm:$0x1] %v1593_v63 }
 0x202   :  { %1609 = dma.vmem_to_hbm [thread:$0]  %s1602_s18, 32, %s1604_s21, [#allocation4], %s2470_s22, %s2470_s22, %s2471_s23  }
 0x204   :  { %v1590_v35 = vpop.f32.mrf.mxu3 }
 0x205   :  { %2457 = dma.done.wait [#allocation4], 32  }
 0x206   :  { %2458 = vsyncadd [#allocation4], 4294967264 }
 0x207   :  { %1614 = vsyncpa [#allocation3], 1 }
 0x208   :  { %1615 = vsyncpa [#allocation6], 1 }
 0x209   :  { %1616 = vsyncpa [#allocation9], 1 }
 0x20a   :  { %1617 = vsyncpa [#allocation4], 1 }

</bundles_post_ra>
